<compile_context>
chip_gen: v7x
topology: tpu7x:2x2x1
jax: 0.10.0
libtpu: 0.0.40
codegen_flags: <defaults>
</compile_context>

<pallas_src>
import jax
import jax.numpy as jnp
from jax.experimental import pallas as pl
from jax.experimental.pallas import tpu as pltpu


def _round_up(n: int, m: int) -> int:
    return ((n + m - 1) // m) * m


def mlp_kernel(x_ref, w1_ref, b1_ref, w11_ref, b11_ref, w2_ref, b2_ref, o_ref):
    # layer1 + relu  (bf16 operands, f32 accumulate, f32 epilogue)
    h1 = jnp.dot(x_ref[...], w1_ref[...], preferred_element_type=jnp.float32)
    h1 = jnp.maximum(h1 + b1_ref[...], 0.0)
    # layer11 + relu
    h2 = jnp.dot(h1.astype(jnp.bfloat16), w11_ref[...],
                 preferred_element_type=jnp.float32)
    h2 = jnp.maximum(h2 + b11_ref[...], 0.0)
    # layer2 (no activation)
    out = jnp.dot(h2.astype(jnp.bfloat16), w2_ref[...],
                  preferred_element_type=jnp.float32)
    o_ref[...] = (out + b2_ref[...]).astype(o_ref.dtype)


def neural_net_forward(x, params, *, batch_tile=None):
    """x: [B, input_size] float32. params: dict of w1,b1,w11,b11,w2,b2
    (weights stored [in_features, out_features])."""
    w1, b1 = params["w1"], params["b1"]
    w11, b11 = params["w11"], params["b11"]
    w2, b2 = params["w2"], params["b2"]

    B, in_dim = x.shape
    hidden = w1.shape[1]
    mid = w11.shape[1]
    out_dim = w2.shape[1]

    # Pad every feature dim to a multiple of 128 lanes (zeros -> identical math
    # on the real columns; removes masked lane tails and masked output stores).
    in_p = _round_up(in_dim, 128)
    hid_p = _round_up(hidden, 128)
    mid_p = _round_up(mid, 128)
    out_p = _round_up(out_dim, 128)

    # Batch tile: fill the MXU M axis and amortize per-grid-step overhead,
    # but keep >=2 grid steps when the batch allows (v7x has 2 TensorCores)
    # and keep the VMEM working set modest on v7x (64 MiB physical).
    if batch_tile is None:
        batch_tile = min(512, _round_up(B, 16))
        if _round_up(B, batch_tile) // batch_tile < 2 and batch_tile >= 32:
            batch_tile //= 2
    B_pad = _round_up(B, batch_tile)

    # bf16 matmul operands (MXU-native on v5e/v6e/v7x); biases stay f32.
    x_p = jnp.zeros((B_pad, in_p), jnp.bfloat16).at[:B, :in_dim].set(
        x.astype(jnp.bfloat16))
    w1_p = jnp.zeros((in_p, hid_p), jnp.bfloat16).at[:in_dim, :hidden].set(
        w1.astype(jnp.bfloat16))
    b1_p = jnp.zeros((1, hid_p), jnp.float32).at[:, :hidden].set(b1)
    w11_p = jnp.zeros((hid_p, mid_p), jnp.bfloat16).at[:hidden, :mid].set(
        w11.astype(jnp.bfloat16))
    b11_p = jnp.zeros((1, mid_p), jnp.float32).at[:, :mid].set(b11)
    w2_p = jnp.zeros((mid_p, out_p), jnp.bfloat16).at[:mid, :out_dim].set(
        w2.astype(jnp.bfloat16))
    b2_p = jnp.zeros((1, out_p), jnp.float32).at[:, :out_dim].set(b2)

    grid = (B_pad // batch_tile,)
    out_padded = pl.pallas_call(
        mlp_kernel,
        out_shape=jax.ShapeDtypeStruct((B_pad, out_p), jnp.float32),
        grid=grid,
        in_specs=[
            pl.BlockSpec((batch_tile, in_p), lambda i: (i, 0)),   # x tile
            pl.BlockSpec((in_p, hid_p), lambda i: (0, 0)),        # w1 (resident)
            pl.BlockSpec((1, hid_p), lambda i: (0, 0)),           # b1
            pl.BlockSpec((hid_p, mid_p), lambda i: (0, 0)),       # w11 (resident)
            pl.BlockSpec((1, mid_p), lambda i: (0, 0)),           # b11
            pl.BlockSpec((mid_p, out_p), lambda i: (0, 0)),       # w2 (resident)
            pl.BlockSpec((1, out_p), lambda i: (0, 0)),           # b2
        ],
        out_specs=pl.BlockSpec((batch_tile, out_p), lambda i: (i, 0)),
        compiler_params=pltpu.CompilerParams(
            dimension_semantics=("parallel",),
        ),
    )(x_p, w1_p, b1_p, w11_p, b11_p, w2_p, b2_p)

    # Slice away batch / output-lane padding.
    return out_padded[:B, :out_dim]


def init_params(key, input_size, hidden_size, output):
    """Deterministic synthetic init (shapes match nn.Linear layers of Neural_net,
    weights stored transposed: [in_features, out_features])."""
    ks = jax.random.split(key, 6)

    def lin(kw, kb, fan_in, fan_out):
        bound = 1.0 / jnp.sqrt(fan_in)
        w = jax.random.uniform(kw, (fan_in, fan_out), jnp.float32, -bound, bound)
        b = jax.random.uniform(kb, (1, fan_out), jnp.float32, -bound, bound)
        return w, b

    w1, b1 = lin(ks[0], ks[1], input_size, hidden_size)
    w11, b11 = lin(ks[2], ks[3], hidden_size, 1000)
    w2, b2 = lin(ks[4], ks[5], 1000, output)
    return {"w1": w1, "b1": b1, "w11": w11, "b11": b11, "w2": w2, "b2": b2}


def reference_forward(x, p):
    h = jnp.maximum(x @ p["w1"] + p["b1"], 0.0)
    h = jnp.maximum(h @ p["w11"] + p["b11"], 0.0)
    return h @ p["w2"] + p["b2"]


if __name__ == "__main__":
    key = jax.random.PRNGKey(0)
    kx, kp = jax.random.split(key)

    # Module-implied small shapes: input_size=32, hidden_size=64, output=8.
    B, input_size, hidden_size, output = 256, 32, 64, 8
    x = jax.random.normal(kx, (B, input_size), dtype=jnp.float32)
    params = init_params(kp, input_size, hidden_size, output)

    out = neural_net_forward(x, params)
    out = jax.block_until_ready(out)

    ref = reference_forward(x, params)  # pure f32 reference
    assert out.shape == (B, output)
    # bf16 matmul operands with f32 accumulation -> relaxed tolerance vs f32 ref
    assert jnp.allclose(out, ref, atol=5e-2, rtol=5e-2), (
        float(jnp.max(jnp.abs(out - ref))))

    print("KERNEL_OK")
</pallas_src>

<mosaic_0001>
module attributes {stable_mosaic.version = 11 : i64} {
  func.func @mlp_kernel(%arg0: i32, %arg1: memref<128x128xbf16, #tpu.memory_space<vmem>>, %arg2: memref<128x128xbf16, #tpu.memory_space<vmem>>, %arg3: memref<1x128xf32, #tpu.memory_space<vmem>>, %arg4: memref<128x1024xbf16, #tpu.memory_space<vmem>>, %arg5: memref<1x1024xf32, #tpu.memory_space<vmem>>, %arg6: memref<1024x128xbf16, #tpu.memory_space<vmem>>, %arg7: memref<1x128xf32, #tpu.memory_space<vmem>>, %arg8: memref<128x128xf32, #tpu.memory_space<vmem>>) attributes {dimension_semantics = [#tpu.dimension_semantics<parallel>], iteration_bounds = array<i64: 2>, scalar_prefetch = 0 : i64, scratch_operands = 0 : i64, tpu.core_type = #tpu.core_type<tc>, window_params = [{transform_indices = @transform_0, window_bounds = array<i64: 128, 128>}, {pipeline_mode = #tpu.pipeline_mode<synchronous>, transform_indices = @transform_1, window_bounds = array<i64: 128, 128>}, {pipeline_mode = #tpu.pipeline_mode<synchronous>, transform_indices = @transform_2, window_bounds = array<i64: 1, 128>}, {pipeline_mode = #tpu.pipeline_mode<synchronous>, transform_indices = @transform_3, window_bounds = array<i64: 128, 1024>}, {pipeline_mode = #tpu.pipeline_mode<synchronous>, transform_indices = @transform_4, window_bounds = array<i64: 1, 1024>}, {pipeline_mode = #tpu.pipeline_mode<synchronous>, transform_indices = @transform_5, window_bounds = array<i64: 1024, 128>}, {pipeline_mode = #tpu.pipeline_mode<synchronous>, transform_indices = @transform_6, window_bounds = array<i64: 1, 128>}, {transform_indices = @transform_7, window_bounds = array<i64: 128, 128>}]} {
    %c0 = arith.constant 0 : index
    %c0_0 = arith.constant 0 : index
    %0 = vector.load %arg1[%c0, %c0_0] : memref<128x128xbf16, #tpu.memory_space<vmem>>, vector<128x128xbf16>
    %c0_1 = arith.constant 0 : index
    %c0_2 = arith.constant 0 : index
    %1 = vector.load %arg2[%c0_1, %c0_2] : memref<128x128xbf16, #tpu.memory_space<vmem>>, vector<128x128xbf16>
    %cst = arith.constant dense<0.000000e+00> : vector<128x128xf32>
    %2 = tpu.matmul %0, %1, %cst {dimension_numbers = #tpu.dot_dimension_numbers<[1], [0], [0], [1], [0, 0, 1, 1], [], []>} : vector<128x128xbf16>, vector<128x128xbf16>, vector<128x128xf32> -> vector<128x128xf32>
    %c0_3 = arith.constant 0 : index
    %c0_4 = arith.constant 0 : index
    %3 = vector.load %arg3[%c0_3, %c0_4] : memref<1x128xf32, #tpu.memory_space<vmem>>, vector<1x128xf32>
    %4 = vector.broadcast %3 : vector<1x128xf32> to vector<128x128xf32>
    %5 = arith.addf %2, %4 : vector<128x128xf32>
    %cst_5 = arith.constant 0.000000e+00 : f32
    %6 = vector.broadcast %cst_5 : f32 to vector<128x128xf32>
    %7 = arith.maximumf %5, %6 : vector<128x128xf32>
    %8 = arith.truncf %7 : vector<128x128xf32> to vector<128x128xbf16>
    %c0_6 = arith.constant 0 : index
    %c0_7 = arith.constant 0 : index
    %9 = vector.load %arg4[%c0_6, %c0_7] : memref<128x1024xbf16, #tpu.memory_space<vmem>>, vector<128x1024xbf16>
    %cst_8 = arith.constant dense<0.000000e+00> : vector<128x1024xf32>
    %10 = tpu.matmul %8, %9, %cst_8 {dimension_numbers = #tpu.dot_dimension_numbers<[1], [0], [0], [1], [0, 0, 1, 1], [], []>} : vector<128x128xbf16>, vector<128x1024xbf16>, vector<128x1024xf32> -> vector<128x1024xf32>
    %c0_9 = arith.constant 0 : index
    %c0_10 = arith.constant 0 : index
    %11 = vector.load %arg5[%c0_9, %c0_10] : memref<1x1024xf32, #tpu.memory_space<vmem>>, vector<1x1024xf32>
    %12 = vector.broadcast %11 : vector<1x1024xf32> to vector<128x1024xf32>
    %13 = arith.addf %10, %12 : vector<128x1024xf32>
    %cst_11 = arith.constant 0.000000e+00 : f32
    %14 = vector.broadcast %cst_11 : f32 to vector<128x1024xf32>
    %15 = arith.maximumf %13, %14 : vector<128x1024xf32>
    %16 = arith.truncf %15 : vector<128x1024xf32> to vector<128x1024xbf16>
    %c0_12 = arith.constant 0 : index
    %c0_13 = arith.constant 0 : index
    %17 = vector.load %arg6[%c0_12, %c0_13] : memref<1024x128xbf16, #tpu.memory_space<vmem>>, vector<1024x128xbf16>
    %cst_14 = arith.constant dense<0.000000e+00> : vector<128x128xf32>
    %18 = tpu.matmul %16, %17, %cst_14 {dimension_numbers = #tpu.dot_dimension_numbers<[1], [0], [0], [1], [0, 0, 1, 1], [], []>} : vector<128x1024xbf16>, vector<1024x128xbf16>, vector<128x128xf32> -> vector<128x128xf32>
    %c0_15 = arith.constant 0 : index
    %c0_16 = arith.constant 0 : index
    %19 = vector.load %arg7[%c0_15, %c0_16] : memref<1x128xf32, #tpu.memory_space<vmem>>, vector<1x128xf32>
    %20 = vector.broadcast %19 : vector<1x128xf32> to vector<128x128xf32>
    %21 = arith.addf %18, %20 : vector<128x128xf32>
    %c0_17 = arith.constant 0 : index
    %c0_18 = arith.constant 0 : index
    %22 = vector.load %arg8[%c0_17, %c0_18] : memref<128x128xf32, #tpu.memory_space<vmem>>, vector<128x128xf32>
    tpu.vector_store %arg8[%c0_17, %c0_18], %21 {strides = array<i32>} : memref<128x128xf32, #tpu.memory_space<vmem>>, vector<128x128xf32>,
    return
  }
  func.func @transform_0(%arg0: i32) -> (i32, i32) {
    %c0_i32 = arith.constant 0 : i32
    %c0_i32_0 = arith.constant 0 : i32
    return %arg0, %c0_i32 : i32, i32
  }
  func.func @transform_1(%arg0: i32) -> (i32, i32) {
    %c0_i32 = arith.constant 0 : i32
    %c0_i32_0 = arith.constant 0 : i32
    %c0_i32_1 = arith.constant 0 : i32
    return %c0_i32, %c0_i32_0 : i32, i32
  }
  func.func @transform_2(%arg0: i32) -> (i32, i32) {
    %c0_i32 = arith.constant 0 : i32
    %c0_i32_0 = arith.constant 0 : i32
    %c0_i32_1 = arith.constant 0 : i32
    return %c0_i32, %c0_i32_0 : i32, i32
  }
  func.func @transform_3(%arg0: i32) -> (i32, i32) {
    %c0_i32 = arith.constant 0 : i32
    %c0_i32_0 = arith.constant 0 : i32
    %c0_i32_1 = arith.constant 0 : i32
    return %c0_i32, %c0_i32_0 : i32, i32
  }
  func.func @transform_4(%arg0: i32) -> (i32, i32) {
    %c0_i32 = arith.constant 0 : i32
    %c0_i32_0 = arith.constant 0 : i32
    %c0_i32_1 = arith.constant 0 : i32
    return %c0_i32, %c0_i32_0 : i32, i32
  }
  func.func @transform_5(%arg0: i32) -> (i32, i32) {
    %c0_i32 = arith.constant 0 : i32
    %c0_i32_0 = arith.constant 0 : i32
    %c0_i32_1 = arith.constant 0 : i32
    return %c0_i32, %c0_i32_0 : i32, i32
  }
  func.func @transform_6(%arg0: i32) -> (i32, i32) {
    %c0_i32 = arith.constant 0 : i32
    %c0_i32_0 = arith.constant 0 : i32
    %c0_i32_1 = arith.constant 0 : i32
    return %c0_i32, %c0_i32_0 : i32, i32
  }
  func.func @transform_7(%arg0: i32) -> (i32, i32) {
    %c0_i32 = arith.constant 0 : i32
    %c0_i32_0 = arith.constant 0 : i32
    return %arg0, %c0_i32 : i32, i32
  }
}

</mosaic_0001>

<bundles_post_ra>
// kernel: tpu_custom_call.1
= control target key start
LH: loop header
LB: loop body
LE: loop exit
PB: predicated region body
PF: predicated region fallthrough
CT: control target
= control target key end

     0   :  { %s4299_s0 = inlined_call_operand.hbm [shape: bf16[256,128], index: 0, kind: input, shape index: {}]   ;;  %s4300_s1 = inlined_call_operand.hbm [shape: bf16[128,128], index: 1, kind: input, shape index: {}]   ;;  %s4301_s2 = inlined_call_operand.vmem [shape: f32[1,128], index: 2, kind: input, shape index: {}]   ;;  %s4302_s3 = inlined_call_operand.hbm [shape: bf16[128,1024], index: 3, kind: input, shape index: {}]   ;;  %s4303_s4 = inlined_call_operand.vmem [shape: f32[1,1024], index: 4, kind: input, shape index: {}]   ;;  %s4304_s5 = inlined_call_operand.hbm [shape: bf16[1024,128], index: 5, kind: input, shape index: {}]   ;;  %s4305_s6 = inlined_call_operand.vmem [shape: f32[1,128], index: 6, kind: input, shape index: {}]   ;;  %s4306_s7 = inlined_call_operand.hbm [shape: f32[256,128], index: 7, kind: output, shape index: {}]  }
   0x1   :  { %4315 = sst [smem:[#allocation16_spill]] %s4300_s1 }
   0x2   :  { %12 = vsyncpa [#allocation3], 0 }
   0x3   :  { %14 = vsyncpa [#allocation3 + $0x1], 0 }
   0x4   :  { %15 = vsyncpa [#allocation6], 0 }
   0x5   :  { %16 = vsyncpa [#allocation9], 0 }
   0x6   :  { %17 = vsyncpa [#allocation4], 0 }
   0x7   :  { %19 = vsyncpa [#allocation4 + $0x1], 0  ;;  %s3603_s24 = smov 0   ;;  %s3605_s25 = smov 0  }
   0x8   :  { %s3607_s26 = smov 0   ;;  %s3609_s27 = smov 0  }
   0x9 LB: > { %s3624_s28 = sadd.s32 4294967295, %s3549_s27   ;;  %s2709_s29 = sadd.s32 4294967294, %s3549_s27   ;;  %s3549_s27 = sphi %s3609_s27, %s4340_s27   ;;  %s3545_s26 = sphi %s3607_s26, %s4339_s26   ;;  %s3541_s25 = sphi %s3605_s25, %s4338_s25   ;;  %s3537_s24 = sphi %s3603_s24, %s4337_s24  }
   0xa   : > { %p45_p0 = scmp.ne.s32.totalorder %s3541_s25, %s3537_s24  ;;  %p4307_p1 = scmp.eq.s32.totalorder %s3624_s28, 0 }
   0xb   : > { %p201_p3 = scmp.eq.s32.totalorder %s2709_s29, 1  ;;  %p2710_p5 = scmp.ge.s32.totalorder %s3549_s27, 1 }
   0xc   : > { %p3633_p4 = por %p4307_p1, %p45_p0  ;;  %p208_p7 = scmp.lt.s32.totalorder %s3549_s27, 3 }
   0xd   : > { %p3638_p6 = por %p201_p3, %p45_p0  ;;  %s3551_s10 = smov [#allocation5]  }
   0xe   : > { %s4316_s30 = scalar_select %p3633_p4, 1, 0 }
   0xf   : > { %s4317_s8 = scalar_select %p3638_p6, 1, 0 }
  0x10   : > { %p3643_p8 = pnand %p2710_p5, %p208_p7  ;;  %s220_s11 = sshll.u32 %s3551_s10, 4  ;;  %s3647_s11 = int_to_ptr.vmem [resolvable:$true] %s220_s11 }
  0x11   : > { %4318 = sst [smem:[#allocation15_spill]] %s4317_s8  ;;  %s3552_s13 = smov [#allocation7]  }
  0x12   : > { %s4319_s9 = scalar_select %p3643_p8, 1, 0 }
  0x13   : > { %p3213_p9 = pneg %p3643_p8  ;;  %s236_s14 = sshll.u32 %s3552_s13, 4  ;;  %s3658_s14 = int_to_ptr.vmem [resolvable:$true] %s236_s14 }
  0x14   : > { %s4321_s1 = sld [smem:[#allocation16_spill]] }
  0x15   : > { %p3654_p11 = pnand %p3213_p9, %p4307_p1 }
  0x17   : > { %p3668_p13 = pneg %p3654_p11 }
  0x1a   : > { %s3361_s17 = scalar_lea.hbm %s4321_s1, 1024 }
  0x1b   : > { %p3362_p12 = scmp.ne.s32.totalorder %s4321_s1, %s3361_s17  ;;  %p3368_p5 = scmp.lt.u32.totalorder %s3361_s17, %s4321_s1 }
  0x1d   : > { %p3364_p0 = pnand %p3668_p13, %p3362_p12 }
  0x1f   : > { %p3365_p3 = pneg %p3364_p0 }
  0x21   : > { %p3370_p7 = pnand %p3368_p5, %p3365_p3 }
  0x23   : > { %3373 = shalt.err (!%p3370_p7)
}
  0x24   : > { %s3374_s23 = scalar_lea.vmem %s3647_s11, 1024  ;;  %p3382_p2 = scmp.lt.s32.totalorder %s3647_s11, %s3647_s11 }
  0x25   : > { %p3375_p9 = scmp.ne.s32.totalorder %s3647_s11, %s3374_s23  ;;  %p3383_p6 = scmp.lt.s32.totalorder %s3374_s23, %s3374_s23 }
  0x27   : > { %p3377_p10 = pnand %p3375_p9, %p3668_p13  ;;  %p3384_p12 = por %p3383_p6, %p3382_p2 }
  0x29   : > { %p3378_p1 = pneg %p3377_p10 }
  0x2b   : > { %p3385_p0 = pnand %p3384_p12, %p3378_p1 }
  0x2d   : > { %3388 = shalt.err (!%p3385_p0)
}
  0x2e   : > { %s4308_s29 = smov 64   ;;  %s4310_s10 = smov 4  }
  0x2f   : > { %3216 = dma.hbm_to_vmem [thread:$0]  (!%p3654_p11), %s4321_s1, 1024, %s3647_s11, [#allocation6], %s4308_s29, %s4308_s29, %s4310_s10  }
  0x30   : > { %s3389_s18 = scalar_lea.hbm %s4302_s3, 8192 }
  0x31   : > { %p3390_p1 = scmp.ne.s32.totalorder %s4302_s3, %s3389_s18  ;;  %p3396_p10 = scmp.lt.u32.totalorder %s3389_s18, %s4302_s3 }
  0x33   : > { %p3392_p2 = pnand %p3390_p1, %p3668_p13 }
  0x35   : > { %p3393_p6 = pneg %p3392_p2 }
  0x37   : > { %p3398_p3 = pnand %p3396_p10, %p3393_p6 }
  0x39   : > { %3401 = shalt.err (!%p3398_p3)
}
  0x3a   : > { %s3402_s11 = scalar_lea.vmem %s3658_s14, 8192  ;;  %p3410_p12 = scmp.lt.s32.totalorder %s3658_s14, %s3658_s14 }
  0x3b   : > { %p3403_p5 = scmp.ne.s32.totalorder %s3658_s14, %s3402_s11  ;;  %p3411_p0 = scmp.lt.s32.totalorder %s3402_s11, %s3402_s11 }
  0x3d   : > { %p3405_p7 = pnand %p3403_p5, %p3668_p13  ;;  %p3412_p1 = por %p3411_p0, %p3410_p12 }
  0x3f   : > { %p3406_p9 = pneg %p3405_p7 }
  0x41   : > { %p3413_p2 = pnand %p3412_p1, %p3406_p9 }
  0x43   : > { %3416 = shalt.err (!%p3413_p2)
}
  0x44   : > { %s3555_s13 = smov 512   ;;  %s3556_s15 = smov 32  }
  0x45   : > { %3219 = dma.hbm_to_vmem [thread:$0]  (!%p3654_p11), %s4302_s3, 8192, %s3658_s14, [#allocation6], %s3555_s13, %s3555_s13, %s3556_s15  }
  0x46   : > { %s3557_s18 = smov [#allocation8]   ;;  %s3716_s21 = sadd.s32 1, %s3549_s27  }
  0x47   : > { %s252_s19 = sshll.u32 %s3557_s18, 4  ;;  %s3417_s11 = scalar_lea.hbm %s4304_s5, 8192  ;;  %s253_s19 = int_to_ptr.vmem [resolvable:$true] %s252_s19 }
  0x48   : > { %p3418_p6 = scmp.ne.s32.totalorder %s4304_s5, %s3417_s11  ;;  %p3424_p5 = scmp.lt.u32.totalorder %s3417_s11, %s4304_s5 }
  0x4a   : > { %p3420_p10 = pnand %p3418_p6, %p3668_p13 }
  0x4c   : > { %p3421_p3 = pneg %p3420_p10 }
  0x4e   : > { %p3426_p7 = pnand %p3424_p5, %p3421_p3 }
  0x50   : > { %3429 = shalt.err (!%p3426_p7)
}
  0x51   : > { %s3430_s14 = scalar_lea.vmem %s253_s19, 8192  ;;  %p3438_p1 = scmp.lt.s32.totalorder %s253_s19, %s253_s19 }
  0x52   : > { %p3431_p9 = scmp.ne.s32.totalorder %s253_s19, %s3430_s14  ;;  %p3439_p2 = scmp.lt.s32.totalorder %s3430_s14, %s3430_s14 }
  0x54   : > { %p3433_p12 = pnand %p3431_p9, %p3668_p13  ;;  %p3440_p4 = por %p3439_p2, %p3438_p1 }
  0x56   : > { %p3434_p0 = pneg %p3433_p12 }
  0x58   : > { %p3441_p8 = pnand %p3440_p4, %p3434_p0 }
  0x5a   : > { %3444 = shalt.err (!%p3441_p8)
}
  0x5b   : > { %s4323_s29 = smov 4   ;;  %s4324_s10 = smov 64  }
  0x5c   : > { %3222 = dma.hbm_to_vmem [thread:$0]  (!%p3654_p11), %s4304_s5, 8192, %s253_s19, [#allocation9], %s4324_s10, %s4324_s10, %s4323_s29  }
  0x5d   : > { %s29_s20 = ssub.s32 %s3549_s27, %s3716_s21  ;;  %s32_s12 = sadd.s32 1, %s3545_s26 }
  0x5e   : > { %p30_p4 = scmp.eq.s32.totalorder %s29_s20, 0  ;;  %p39_p8 = scmp.ne.s32.totalorder %s3545_s26, %s3541_s25 }
  0x5f   : > { %p40_p13 = scmp.eq.s32.totalorder %s3549_s27, 0  ;;  %p3234_p6 = scmp.lt.s32.totalorder %s3549_s27, 2 }
  0x60   : > { %s3747_s13 = scalar_select %p30_p4, %s3545_s26, %s32_s12  }
  0x61   : > { %p41_p10 = por %p40_p13, %p39_p8  ;;  %p4325_p3 = scmp.eq.s32.totalorder %s3624_s28, 1 }
  0x62   : > { %s269_s16 = sand.u32 1, %s3545_s26   ;;  %s2875_s17 = sshll.u32 %s3549_s27, 10 }
  0x63   : > { %p3751_p5 = por %p4325_p3, %p39_p8  ;;  %s2715_s18 = sshll.u32 %s269_s16, 6 }
  0x64   : > { %s3760_s19 = scalar_lea.hbm %s4299_s0, %s2875_s17  ;;  %s273_s11 = scalar_lea.vmem [#allocation2], %s2715_s18 }
  0x65   : > { %s280_s14 = sshll.u32 %s273_s11, 4  ;;  %p3762_p11 = pnand %p3234_p6, %p41_p10  ;;  %s3766_s14 = int_to_ptr.vmem [resolvable:$true] %s280_s14 }
  0x66   : > { %s3768_s8 = scalar_lea.sflag [#allocation3], %s269_s16  ;;  %s3445_s20 = scalar_lea.hbm %s3760_s19, 1024 }
  0x67   : > { %p3446_p7 = scmp.ne.s32.totalorder %s3760_s19, %s3445_s20  ;;  %p3447_p9 = pneg %p3762_p11 }
  0x68   : > { %s3450_s18 = scalar_lea.hbm %s4299_s0, 2048  ;;  %p3451_p1 = scmp.lt.u32.totalorder %s3760_s19, %s4299_s0 }
  0x69   : > { %p3448_p12 = pnand %p3447_p9, %p3446_p7  ;;  %p3452_p2 = scmp.lt.u32.totalorder %s3450_s18, %s3445_s20 }
  0x6a   : > { %p3454_p8 = scmp.lt.u32.totalorder %s3445_s20, %s3760_s19 }
  0x6b   : > { %p3449_p0 = pneg %p3448_p12  ;;  %p3453_p4 = por %p3452_p2, %p3451_p1 }
  0x6d   : > { %p3455_p13 = por %p3454_p8, %p3453_p4 }
  0x6f   : > { %p3456_p6 = pnand %p3455_p13, %p3449_p0 }
  0x71   : > { %3459 = shalt.err (!%p3456_p6)
}
  0x72   : > { %s3460_s16 = scalar_lea.vmem %s3766_s14, 1024  ;;  %s3558_s11 = smov [#allocation2]  }
  0x73   : > { %p3461_p10 = scmp.ne.s32.totalorder %s3766_s14, %s3460_s16  ;;  %s3465_s12 = sshll.u32 %s3558_s11, 4  ;;  %s3466_s12 = int_to_ptr.vmem [resolvable:$false] %s3465_s12 }
  0x74   : > { %s3467_s17 = scalar_lea.vmem %s3466_s12, 2048  ;;  %p3468_p12 = scmp.lt.s32.totalorder %s3766_s14, %s3466_s12 }
  0x75   : > { %p3463_p3 = pnand %p3461_p10, %p3447_p9  ;;  %p3469_p1 = scmp.lt.s32.totalorder %s3467_s17, %s3460_s16 }
  0x77   : > { %p3464_p7 = pneg %p3463_p3  ;;  %p3470_p2 = por %p3469_p1, %p3468_p12 }
  0x79   : > { %p3471_p4 = pnand %p3470_p2, %p3464_p7 }
  0x7b   : > { %3474 = shalt.err (!%p3471_p4)
}
  0x7c   : > { %3226 = dma.hbm_to_vmem [thread:$0]  (!%p3762_p11), %s3760_s19, 1024, %s3766_s14, %s3768_s8, %s4324_s10, %s4324_s10, %s4323_s29  }
  0x7d   : > { %p4328_p9 = scmp.ne.s32.totalorder %s4319_s9, 0 }
  0x7e   : > { %s3802_s20 = sand.u32 (!%p4328_p9), 1, %s3541_s25   ;;  %p4329_p0 = scmp.ne.s32.totalorder (!%p4328_p9), %s4316_s30, 0 }
  0x7f   : > { %292 = sbr.rel (%p4328_p9) target bundleno = 988 (0x3dc), region = 48  ;;  %s2719_s18 = sshll.u32 (!%p4328_p9), %s3802_s20, 6 }
  0x80   : > { %s295_s22 = scalar_lea.sflag (!%p4328_p9), [#allocation3], %s3802_s20  ;;  %s3806_s23 = scalar_lea.vmem (!%p4328_p9), [#allocation2], %s2719_s18 }
  0x86   : > { %3520 = dma.done.wait (%p4329_p0), %s295_s22, 1024  }
  0x87   : > { %3522 = vsyncadd (%p4329_p0), %s295_s22, 4294966272  ;;  %p4330_p11 = scmp.eq.s32.totalorder %s3624_s28, 0 }
  0x89   : > { %3524 = dma.done.wait (%p4330_p11), [#allocation6], 9216   ;;  %p4331_p8 = pmov %p4330_p11 }
  0x8b   : > { %3526 = vsyncadd (%p4331_p8), [#allocation6], 4294958080  ;;  %p4332_p13 = pmov %p4331_p8 }
  0x8c   : > { %p4333_p6 = pmov %p4331_p8 }
  0x8d   : > { %3528 = dma.done.wait (%p4332_p13), [#allocation9], 8192  }
  0x8e   : > { %3530 = vsyncadd (%p4333_p6), [#allocation9], 4294959104  ;;  %v3281_v0 = vld [vmem:[#allocation5] sm:$0xff]   ;;  %v3282_v1 = vld [vmem:[#allocation5 + $0x8] sm:$0xff]   ;;  %s2723_s1 = sshll.u32 %s3802_s20, 7  ;;  %s2876_s16 = sshll.u32 %s3624_s28, 11 }
  0x8f   : > { %3149 = vmatprep.subr.bf16.mxu0 %v3281_v0  ;;  %v3283_v2 = vld [vmem:[#allocation5 + $0x10] sm:$0xff]   ;;  %v3284_v3 = vld [vmem:[#allocation5 + $0x18] sm:$0xff]   ;;  %v3289_v4 = vld [vmem:[%s3806_s23] sm:$0xff]   ;;  %s4216_s8 = scalar_lea.vmem [#allocation10], %s2723_s1  ;;  %s4251_s18 = scalar_lea.hbm %s4306_s7, %s2876_s16 }
  0x90   : > { %3150 = vmatpush3.bf16.msra.mxu0 %v3281_v0  ;;  %3165 = vmatprep.mubr.bf16.mxu0 %v3289_v4  ;;  %v3285_v5 = vld [vmem:[#allocation5 + $0x20] sm:$0xff]   ;;  %v3286_v6 = vld [vmem:[#allocation5 + $0x28] sm:$0xff]   ;;  %v3287_v16 = vld [vmem:[#allocation5 + $0x30] sm:$0xff]   ;;  %s2607_s11 = sshll.u32 %s4216_s8, 4  ;;  %s2594_s22 = scalar_lea.sflag [#allocation4], %s3802_s20  ;;  %s4253_s11 = int_to_ptr.vmem [resolvable:$true] %s2607_s11 }
  0x91   : > { %3151 = vmatprep.subr.bf16.mxu0 %v3282_v1  ;;  %v600_v7 = vld [vmem:[#allocation7] sm:$0xff]  ;;  %v3288_v21 = vld [vmem:[#allocation5 + $0x38] sm:$0xff]   ;;  %v601_v22 = vld [vmem:[#allocation7 + $0x8] sm:$0xff]  ;;  %s3560_s28 = smov [#allocation10]  }
  0x92   : > { %v604_v8 = vld [vmem:[#allocation7 + $0x20] sm:$0xff]  ;;  %v605_v23 = vld [vmem:[#allocation7 + $0x28] sm:$0xff]  ;;  %v3291_v35 = vld [vmem:[%s3806_s23 + $0x10] sm:$0xff]   ;;  %s3479_s30 = sshll.u32 %s3560_s28, 4  ;;  %s3480_s30 = int_to_ptr.vmem [resolvable:$false] %s3479_s30 }
  0x93   : > { %v2742_v9 = vcombine.high %v600_v7, %v604_v8  ;;  %v2741_v10 = vcombine.low %v600_v7, %v604_v8  ;;  %v608_v11 = vld [vmem:[#allocation7 + $0x40] sm:$0xff]  ;;  %v609_v28 = vld [vmem:[#allocation7 + $0x48] sm:$0xff]  ;;  %v2744_v31 = vcombine.high %v601_v22, %v605_v23  ;;  %v2743_v37 = vcombine.low %v601_v22, %v605_v23  ;;  %v3292_v46 = vld [vmem:[%s3806_s23 + $0x18] sm:$0xff]   ;;  %s3481_s9 = scalar_lea.vmem %s3480_s30, 4096  ;;  %p3482_p12 = scmp.lt.s32.totalorder %s4253_s11, %s3480_s30 }
  0x94   : > { %3152 = vmatpush3.bf16.msra.mxu0 %v3282_v1  ;;  %v612_v12 = vld [vmem:[#allocation7 + $0x60] sm:$0xff]  ;;  %v613_v29 = vld [vmem:[#allocation7 + $0x68] sm:$0xff]  ;;  %v3295_v59 = vld [vmem:[%s3806_s23 + $0x30] sm:$0xff]  }
  0x95   : > { %3153 = vmatprep.subr.bf16.mxu0 %v3283_v2  ;;  %v2750_v13 = vcombine.high %v608_v11, %v612_v12  ;;  %v616_v14 = vld [vmem:[#allocation7 + $0x80] sm:$0xff]  ;;  %1026 = vmatprep.subr.bf16.mxu1 %v2742_v9  ;;  %v2749_v17 = vcombine.low %v608_v11, %v612_v12  ;;  %v3290_v30 = vld [vmem:[%s3806_s23 + $0x8] sm:$0xff]   ;;  %v2752_v40 = vcombine.high %v609_v28, %v613_v29  ;;  %v3296_v63 = vld [vmem:[%s3806_s23 + $0x38] sm:$0xff]  }
  0x96   : > { %v620_v15 = vld [vmem:[#allocation7 + $0xa0] sm:$0xff]  ;;  %1027 = vmatpush1.bf16.msra.mxu1 %v2741_v10  ;;  %v617_v38 = vld [vmem:[#allocation7 + $0x88] sm:$0xff]  ;;  %v2751_v43 = vcombine.low %v609_v28, %v613_v29  ;;  %v607_v22 = vld [vmem:[#allocation7 + $0x38] sm:$0xff] }
  0x97   : > { %1028 = vmatprep.subr.bf16.mxu1 %v2750_v13  ;;  %v2758_v18 = vcombine.high %v616_v14, %v620_v15  ;;  %v624_v19 = vld [vmem:[#allocation7 + $0xc0] sm:$0xff]  ;;  %v2757_v24 = vcombine.low %v616_v14, %v620_v15  ;;  %v621_v39 = vld [vmem:[#allocation7 + $0xa8] sm:$0xff] }
  0x98   : > { %3154 = vmatpush3.bf16.msra.mxu0 %v3283_v2  ;;  %v628_v20 = vld [vmem:[#allocation7 + $0xe0] sm:$0xff]  ;;  %v625_v44 = vld [vmem:[#allocation7 + $0xc8] sm:$0xff]  ;;  %v2760_v47 = vcombine.high %v617_v38, %v621_v39  ;;  %v2759_v50 = vcombine.low %v617_v38, %v621_v39 }
  0x99   : > { %3155 = vmatprep.subr.bf16.mxu0 %v3284_v3  ;;  %v632_v25 = vld [vmem:[#allocation7 + $0x100] sm:$0xff]  ;;  %v2766_v27 = vcombine.high %v624_v19, %v628_v20  ;;  %v2765_v32 = vcombine.low %v624_v19, %v628_v20  ;;  %v629_v45 = vld [vmem:[#allocation7 + $0xe8] sm:$0xff] }
  0x9a   : > { %1029 = vmatpush1.bf16.msra.mxu1 %v2749_v17  ;;  %v636_v26 = vld [vmem:[#allocation7 + $0x120] sm:$0xff]  ;;  %v633_v51 = vld [vmem:[#allocation7 + $0x108] sm:$0xff]  ;;  %v2768_v53 = vcombine.high %v625_v44, %v629_v45  ;;  %v2767_v54 = vcombine.low %v625_v44, %v629_v45  ;;  %v606_v17 = vld [vmem:[#allocation7 + $0x30] sm:$0xff] }
  0x9b   : > { %1030 = vmatprep.subr.bf16.mxu1 %v2758_v18  ;;  %v640_v33 = vld [vmem:[#allocation7 + $0x140] sm:$0xff]  ;;  %v2774_v36 = vcombine.high %v632_v25, %v636_v26  ;;  %v2773_v41 = vcombine.low %v632_v25, %v636_v26  ;;  %v637_v52 = vld [vmem:[#allocation7 + $0x128] sm:$0xff]  ;;  %v3559_v18 = vmov 0  }
  0x9c   : > { %3156 = vmatpush3.bf16.msra.mxu0 %v3284_v3  ;;  %v644_v34 = vld [vmem:[#allocation7 + $0x160] sm:$0xff]  ;;  %v641_v55 = vld [vmem:[#allocation7 + $0x148] sm:$0xff]  ;;  %v2776_v58 = vcombine.high %v633_v51, %v637_v52  ;;  %v2775_v60 = vcombine.low %v633_v51, %v637_v52  ;;  %1058 = vmatprep.mubr.bf16.mxu1 %v3559_v18 }
  0x9d   : > { %3157 = vmatprep.subr.bf16.mxu0 %v3285_v5  ;;  %v2782_v42 = vcombine.high %v640_v33, %v644_v34  ;;  %v2781_v48 = vcombine.low %v640_v33, %v644_v34  ;;  %v3293_v49 = vld [vmem:[%s3806_s23 + $0x20] sm:$0xff]   ;;  %v645_v56 = vld [vmem:[#allocation7 + $0x168] sm:$0xff] }
  0x9e   : > { %1031 = vmatpush1.bf16.msra.mxu1 %v2757_v24  ;;  %v3294_v57 = vld [vmem:[%s3806_s23 + $0x28] sm:$0xff]   ;;  %v2784_v61 = vcombine.high %v641_v55, %v645_v56  ;;  %v2783_v62 = vcombine.low %v641_v55, %v645_v56  ;;  %v648_v0 = vld [vmem:[#allocation7 + $0x180] sm:$0xff]  ;;  %s3475_s23 = scalar_lea.vmem %s4253_s11, 2048 }
  0x9f   : > { %1032 = vmatprep.subr.bf16.mxu1 %v2766_v27  ;;  %v652_v1 = vld [vmem:[#allocation7 + $0x1a0] sm:$0xff]  ;;  %v649_v2 = vld [vmem:[#allocation7 + $0x188] sm:$0xff]  ;;  %p3476_p10 = scmp.ne.s32.totalorder %s4253_s11, %s3475_s23  ;;  %p3483_p1 = scmp.lt.s32.totalorder %s3481_s9, %s3475_s23 }
  0xa0   : > { %3158 = vmatpush3.bf16.msra.mxu0 %v3285_v5  ;;  %v2790_v3 = vcombine.high %v648_v0, %v652_v1  ;;  %v653_v4 = vld [vmem:[#allocation7 + $0x1a8] sm:$0xff]  ;;  %v2789_v5 = vcombine.low %v648_v0, %v652_v1  ;;  %v656_v8 = vld [vmem:[#allocation7 + $0x1c0] sm:$0xff]  ;;  %v626_v1 = vld [vmem:[#allocation7 + $0xd0] sm:$0xff] }
  0xa1   : > { %3159 = vmatprep.subr.bf16.mxu0 %v3286_v6  ;;  %v2792_v7 = vcombine.high %v649_v2, %v653_v4  ;;  %v660_v9 = vld [vmem:[#allocation7 + $0x1e0] sm:$0xff]  ;;  %v657_v10 = vld [vmem:[#allocation7 + $0x1c8] sm:$0xff]  ;;  %p3477_p3 = pnand %p3476_p10, %p3751_p5  ;;  %p3484_p2 = por %p3483_p1, %p3482_p12 }
  0xa2   : > { %1033 = vmatpush1.bf16.msra.mxu1 %v2765_v32  ;;  %v2798_v11 = vcombine.high %v656_v8, %v660_v9  ;;  %v661_v12 = vld [vmem:[#allocation7 + $0x1e8] sm:$0xff]  ;;  %v2797_v13 = vcombine.low %v656_v8, %v660_v9  ;;  %v3833_v25 = vld [vmem:[%s4301_s2] ss:$0 sm:$0xff] }
  0xa3   : > { %1034 = vmatprep.subr.bf16.mxu1 %v2774_v36  ;;  %v2799_v14 = vcombine.low %v657_v10, %v661_v12  ;;  %v2800_v15 = vcombine.high %v657_v10, %v661_v12  ;;  %v610_v36 = vld [vmem:[#allocation7 + $0x50] sm:$0xff]  ;;  %p3478_p7 = pneg %p3477_p3 }
  0xa4   : > { %3160 = vmatpush3.bf16.msra.mxu0 %v3286_v6  ;;  %v2791_v6 = vcombine.low %v649_v2, %v653_v4  ;;  %v630_v2 = vld [vmem:[#allocation7 + $0xf0] sm:$0xff]  ;;  %v627_v4 = vld [vmem:[#allocation7 + $0xd8] sm:$0xff] }
  0xa5   : > { %3161 = vmatprep.subr.bf16.mxu0 %v3287_v16  ;;  %v2770_v12 = vcombine.high %v626_v1, %v630_v2  ;;  %p3485_p4 = pnand %p3484_p2, %p3478_p7 }
  0xa6   : > { %1035 = vmatpush1.bf16.msra.mxu1 %v2773_v41  ;;  %v611_v41 = vld [vmem:[#allocation7 + $0x58] sm:$0xff] }
  0xa7   : > { %1036 = vmatprep.subr.bf16.mxu1 %v2782_v42  ;;  %v615_v42 = vld [vmem:[#allocation7 + $0x78] sm:$0xff] }
  0xa8   : > { %3162 = vmatpush3.bf16.msra.mxu0 %v3287_v16  ;;  %v602_v16 = vld [vmem:[#allocation7 + $0x10] sm:$0xff]  ;;  %v2756_v52 = vcombine.high %v611_v41, %v615_v42 }
  0xa9   : > { %3163 = vmatprep.subr.bf16.mxu0 %v3288_v21  ;;  %v2745_v19 = vcombine.low %v602_v16, %v606_v17  ;;  %v2746_v20 = vcombine.high %v602_v16, %v606_v17  ;;  %v634_v16 = vld [vmem:[#allocation7 + $0x110] sm:$0xff] }
  0xaa   : > { %1037 = vmatpush1.bf16.msra.mxu1 %v2781_v48  ;;  %v618_v48 = vld [vmem:[#allocation7 + $0x90] sm:$0xff] }
  0xab   : > { %1038 = vmatprep.subr.bf16.mxu1 %v2790_v3  ;;  %v638_v17 = vld [vmem:[#allocation7 + $0x130] sm:$0xff] }
  0xac   : > { %3164 = vmatpush3.bf16.msra.mxu0 %v3288_v21  ;;  %v603_v21 = vld [vmem:[#allocation7 + $0x18] sm:$0xff] }
  0xad   : > { %1139 = vmatprep.subr.bf16.mxu0 %v2744_v31  ;;  %v2747_v23 = vcombine.low %v603_v21, %v607_v22  ;;  %v2748_v24 = vcombine.high %v603_v21, %v607_v22 }
  0xae   : > { %1039 = vmatpush1.bf16.msra.mxu1 %v2789_v5  ;;  %v631_v5 = vld [vmem:[#allocation7 + $0xf8] sm:$0xff] }
  0xaf   : > { %3166 = vmatmul.mubr.bf16.vlgmr.msra.gmra.mrb[0].mxu0 %v3290_v30  ;;  %1040 = vmatprep.subr.bf16.mxu1 %v2798_v11 }
  0xb0   : > { %3169 = vmatprep.mubr.bf16.mxu0 %v3291_v35  ;;  %1140 = vmatpush1.bf16.msra.mxu0 %v2743_v37  ;;  %v614_v37 = vld [vmem:[#allocation7 + $0x70] sm:$0xff] }
  0xb1   : > { %1141 = vmatprep.subr.bf16.mxu0 %v2752_v40  ;;  %v2754_v45 = vcombine.high %v610_v36, %v614_v37  ;;  %v2753_v56 = vcombine.low %v610_v36, %v614_v37  ;;  %v643_v36 = vld [vmem:[#allocation7 + $0x158] sm:$0xff] }
  0xb2   : > { %1041 = vmatpush1.bf16.msra.mxu1 %v2797_v13  ;;  %v647_v37 = vld [vmem:[#allocation7 + $0x178] sm:$0xff] }
  0xb3   : > { %1252 = vmatprep.subr.bf16.mxu1 %v2746_v20 }
  0xb4   : > { %1142 = vmatpush1.bf16.msra.mxu0 %v2751_v43 }
  0xb5   : > { %1143 = vmatprep.subr.bf16.mxu0 %v2760_v47 }
  0xb7   : > { %3170 = vmatmul.mubr.bf16.gmra.mrb[4].mxu0 %v3292_v46 }
  0xb8   : > { %3173 = vmatprep.mubr.bf16.mxu0 %v3293_v49  ;;  %1144 = vmatpush1.bf16.msra.mxu0 %v2759_v50  ;;  %v622_v49 = vld [vmem:[#allocation7 + $0xb0] sm:$0xff] }
  0xb9   : > { %1145 = vmatprep.subr.bf16.mxu0 %v2768_v53 }
  0xbc   : > { %1146 = vmatpush1.bf16.msra.mxu0 %v2767_v54 }
  0xbd   : > { %1147 = vmatprep.subr.bf16.mxu0 %v2776_v58 }
  0xbf   : > { %3174 = vmatmul.mubr.bf16.gmra.mrb[8].mxu0 %v3294_v57 }
  0xc0   : > { %3177 = vmatprep.mubr.bf16.mxu0 %v3295_v59  ;;  %1148 = vmatpush1.bf16.msra.mxu0 %v2775_v60  ;;  %v2762_v59 = vcombine.high %v618_v48, %v622_v49 }
  0xc1   : > { %1149 = vmatprep.subr.bf16.mxu0 %v2784_v61  ;;  %v2755_v61 = vcombine.low %v611_v41, %v615_v42 }
  0xc4   : > { %1150 = vmatpush1.bf16.msra.mxu0 %v2783_v62  ;;  %v619_v62 = vld [vmem:[#allocation7 + $0x98] sm:$0xff] }
  0xc5   : > { %1151 = vmatprep.subr.bf16.mxu0 %v2792_v7  ;;  %v2761_v7 = vcombine.low %v618_v48, %v622_v49 }
  0xc7   : > { %3178 = vmatmul.mubr.bf16.gmra.mrb[12].mxu0 %v3296_v63  ;;  %v623_v63 = vld [vmem:[#allocation7 + $0xb8] sm:$0xff] }
  0xc8   : > { %1152 = vmatpush1.bf16.msra.mxu0 %v2791_v6  ;;  %1171 = vmatprep.mubr.bf16.mxu0 %v3559_v18  ;;  %v2764_v9 = vcombine.high %v619_v62, %v623_v63  ;;  %v2763_v13 = vcombine.low %v619_v62, %v623_v63  ;;  %v651_v62 = vld [vmem:[#allocation7 + $0x198] sm:$0xff] }
  0xc9   : > { %1153 = vmatprep.subr.bf16.mxu0 %v2800_v15  ;;  %v655_v63 = vld [vmem:[#allocation7 + $0x1b8] sm:$0xff] }
  0xcc   : > { %1154 = vmatpush1.bf16.msra.mxu0 %v2799_v14 }
  0xcd   : > { %1365 = vmatprep.subr.bf16.mxu0 %v2748_v24 }
 0x182   : > { %v3167_v26 = vpop.f32.mrb[0].mxu0 }
 0x183   : > { %v522_v27 = vadd.f32 %v3167_v26, %v3833_v25  ;;  %v513_v28 = vpop.f32.mrb[1].mxu0  ;;  %v2769_v26 = vcombine.low %v626_v1, %v630_v2  ;;  %v658_v1 = vld [vmem:[#allocation7 + $0x1d0] sm:$0xff] }
 0x184   : > { %v514_v29 = vadd.f32 %v3833_v25, %v513_v28  ;;  %v3168_v30 = vpop.f32.mrb[2].mxu0  ;;  %v2778_v28 = vcombine.high %v634_v16, %v638_v17  ;;  %v662_v2 = vld [vmem:[#allocation7 + $0x1f0] sm:$0xff] }
 0x185   : > { %v525_v31 = vadd.f32 %v3168_v30, %v3833_v25  ;;  %v516_v32 = vpop.f32.mrb[3].mxu0  ;;  %v578_v34 = vmax.f32 %v522_v27, 0.0  ;;  %v635_v30 = vld [vmem:[#allocation7 + $0x118] sm:$0xff] }
 0x186   : > { %v517_v33 = vadd.f32 %v3833_v25, %v516_v32  ;;  %v576_v38 = vmax.f32 %v514_v29, 0.0  ;;  %v2771_v29 = vcombine.low %v627_v4, %v631_v5 }
 0x187   : > { %v579_v35 = vmax.f32 %v525_v31, 0.0  ;;  %v639_v31 = vld [vmem:[#allocation7 + $0x138] sm:$0xff] }
 0x188   : > { %v577_v39 = vmax.f32 %v517_v33, 0.0  ;;  %v642_v33 = vld [vmem:[#allocation7 + $0x150] sm:$0xff]  ;;  %v2780_v42 = vcombine.high %v635_v30, %v639_v31 }
 0x189   : > { %v3839_v40 = vpack.c.bf16 %v579_v35, %v578_v34  ;;  %v646_v34 = vld [vmem:[#allocation7 + $0x170] sm:$0xff] }
 0x18a   : > { %v3841_v43 = vpack.c.bf16 %v577_v39, %v576_v38  ;;  %v3171_v44 = vpop.f32.mrb[4].mxu0  ;;  %v2777_v39 = vcombine.low %v634_v16, %v638_v17  ;;  %v3306_v16 = vld [vmem:[#allocation8 + $0xc0] sm:$0xff]  }
 0x18b   : > { %v538_v46 = vadd.f32 %v3171_v44, %v3833_v25  ;;  %v529_v47 = vpop.f32.mrb[5].mxu0  ;;  %v3298_v17 = vld [vmem:[#allocation8] sm:$0xff]  }
 0x18c   : > { %1059 = vmatmul.mubr.bf16.vlgmr.msra.gmra.mrb[0].mxu1 %v3841_v43  ;;  %1172 = vmatmul.mubr.bf16.vlgmr.msra.gmra.mrb[16].mxu0 %v3841_v43  ;;  %v530_v50 = vadd.f32 %v3833_v25, %v529_v47  ;;  %v3172_v51 = vpop.f32.mrb[6].mxu0  ;;  %v2779_v47 = vcombine.low %v635_v30, %v639_v31  ;;  %v3304_v30 = vld [vmem:[#allocation8 + $0x18] sm:$0xff]  }
 0x18d   : > { %1253 = vmatpush1.bf16.msra.mxu1 %v2745_v19  ;;  %v582_v53 = vmax.f32 %v538_v46, 0.0  ;;  %v541_v54 = vadd.f32 %v3172_v51, %v3833_v25  ;;  %v532_v55 = vpop.f32.mrb[7].mxu0  ;;  %1068 = vmatprep.mubr.bf16.mxu1 %v3559_v18  ;;  %v2772_v19 = vcombine.high %v627_v4, %v631_v5  ;;  %v2786_v46 = vcombine.high %v642_v33, %v646_v34  ;;  %v654_v51 = vld [vmem:[#allocation7 + $0x1b0] sm:$0xff]  ;;  %v659_v5 = vld [vmem:[#allocation7 + $0x1d8] sm:$0xff] }
 0x18e   : > { %v580_v57 = vmax.f32 %v530_v50, 0.0  ;;  %v533_v58 = vadd.f32 %v3833_v25, %v532_v55  ;;  %1181 = vmatprep.mubr.bf16.mxu0 %v3559_v18  ;;  %1254 = vmatprep.subr.bf16.mxu1 %v2754_v45  ;;  %v650_v50 = vld [vmem:[#allocation7 + $0x190] sm:$0xff]  ;;  %v3316_v31 = vld [vmem:[#allocation8 + $0x98] sm:$0xff]  }
 0x18f   : > { %v583_v60 = vmax.f32 %v541_v54, 0.0  ;;  %1366 = vmatpush1.bf16.msra.mxu0 %v2747_v23 }
 0x190   : > { %v581_v0 = vmax.f32 %v533_v58, 0.0  ;;  %1367 = vmatprep.subr.bf16.mxu0 %v2756_v52  ;;  %v2788_v52 = vcombine.high %v643_v36, %v647_v37  ;;  %v2785_v58 = vcombine.low %v642_v33, %v646_v34  ;;  %v3319_v33 = vld [vmem:[#allocation8 + $0xe0] sm:$0xff]  }
 0x191   : > { %v3851_v3 = vpack.c.bf16 %v583_v60, %v582_v53  ;;  %1255 = vmatpush1.bf16.msra.mxu1 %v2753_v56  ;;  %v2794_v60 = vcombine.high %v650_v50, %v654_v51  ;;  %v3307_v34 = vld [vmem:[#allocation8 + $0x20] sm:$0xff]  }
 0x192   : > { %v3853_v6 = vpack.c.bf16 %v581_v0, %v580_v57  ;;  %1256 = vmatprep.subr.bf16.mxu1 %v2762_v59  ;;  %v3175_v8 = vpop.f32.mrb[8].mxu0 }
 0x193   : > { %v554_v10 = vadd.f32 %v3175_v8, %v3833_v25  ;;  %v545_v11 = vpop.f32.mrb[9].mxu0  ;;  %1368 = vmatpush1.bf16.msra.mxu0 %v2755_v61  ;;  %v2787_v61 = vcombine.low %v643_v36, %v647_v37  ;;  %v3320_v36 = vld [vmem:[#allocation8 + $0xa0] sm:$0xff]   ;;  %v3311_v37 = vld [vmem:[#allocation8 + $0x68] sm:$0xff]  }
 0x194   : > { %1069 = vmatmul.mubr.bf16.gmra.mrb[4].mxu1 %v3839_v40  ;;  %1182 = vmatmul.mubr.bf16.gmra.mrb[20].mxu0 %v3839_v40  ;;  %v546_v14 = vadd.f32 %v3833_v25, %v545_v11  ;;  %v3176_v15 = vpop.f32.mrb[10].mxu0  ;;  %v2795_v11 = vcombine.low %v651_v62, %v655_v63 }
 0x195   : > { %1078 = vmatprep.mubr.bf16.mxu1 %v3559_v18  ;;  %1191 = vmatprep.mubr.bf16.mxu0 %v3559_v18  ;;  %v586_v20 = vmax.f32 %v554_v10, 0.0  ;;  %v557_v21 = vadd.f32 %v3176_v15, %v3833_v25  ;;  %v548_v22 = vpop.f32.mrb[11].mxu0  ;;  %v2802_v10 = vcombine.high %v658_v1, %v662_v2  ;;  %v3297_v15 = vld [vmem:[#allocation8 + $0x40] sm:$0xff]  }
 0x196   : > { %1257 = vmatpush1.bf16.msra.mxu1 %v2761_v7  ;;  %v584_v23 = vmax.f32 %v546_v14, 0.0  ;;  %v549_v24 = vadd.f32 %v3833_v25, %v548_v22  ;;  %1369 = vmatprep.subr.bf16.mxu0 %v2764_v9  ;;  %v663_v7 = vld [vmem:[#allocation7 + $0x1f8] sm:$0xff]  ;;  %v2796_v9 = vcombine.high %v651_v62, %v655_v63  ;;  %v3300_v22 = vld [vmem:[#allocation8 + $0x8] sm:$0xff]  }
 0x197   : > { %v587_v27 = vmax.f32 %v557_v21, 0.0  ;;  %1258 = vmatprep.subr.bf16.mxu1 %v2770_v12  ;;  %1370 = vmatpush1.bf16.msra.mxu0 %v2763_v13  ;;  %v2804_v12 = vcombine.high %v659_v5, %v663_v7  ;;  %v2801_v13 = vcombine.low %v658_v1, %v662_v2  ;;  %v2803_v14 = vcombine.low %v659_v5, %v663_v7  ;;  %v3309_v21 = vld [vmem:[#allocation8 + $0xc8] sm:$0xff]  }
 0x198   : > { %v585_v32 = vmax.f32 %v549_v24, 0.0  ;;  %1371 = vmatprep.subr.bf16.mxu0 %v2772_v19  ;;  %v3308_v19 = vld [vmem:[#allocation8 + $0x80] sm:$0xff]   ;;  %v3301_v24 = vld [vmem:[#allocation8 + $0x50] sm:$0xff]  }
 0x199   : > { %v3863_v35 = vpack.c.bf16 %v587_v27, %v586_v20  ;;  %v3299_v20 = vld [vmem:[#allocation8 + $0x48] sm:$0xff]   ;;  %v3302_v27 = vld [vmem:[#allocation8 + $0x10] sm:$0xff]  }
 0x19a   : > { %v3865_v38 = vpack.c.bf16 %v585_v32, %v584_v23  ;;  %1259 = vmatpush1.bf16.msra.mxu1 %v2769_v26  ;;  %v3179_v41 = vpop.f32.mrb[12].mxu0  ;;  %v3310_v23 = vld [vmem:[#allocation8 + $0x88] sm:$0xff]   ;;  %v3313_v26 = vld [vmem:[#allocation8 + $0xd0] sm:$0xff]   ;;  %v3305_v32 = vld [vmem:[#allocation8 + $0x60] sm:$0xff]  }
 0x19b   : > { %1260 = vmatprep.subr.bf16.mxu1 %v2778_v28  ;;  %v570_v44 = vadd.f32 %v3179_v41, %v3833_v25  ;;  %v561_v45 = vpop.f32.mrb[13].mxu0  ;;  %1372 = vmatpush1.bf16.msra.mxu0 %v2771_v29  ;;  %v3314_v28 = vld [vmem:[#allocation8 + $0x90] sm:$0xff]   ;;  %v3303_v29 = vld [vmem:[#allocation8 + $0x58] sm:$0xff]   ;;  %v3322_v41 = vld [vmem:[#allocation8 + $0xa8] sm:$0xff]  }
 0x19c   : > { %1079 = vmatmul.mubr.bf16.gmra.mrb[8].mxu1 %v3853_v6  ;;  %1192 = vmatmul.mubr.bf16.gmra.mrb[24].mxu0 %v3853_v6  ;;  %v562_v48 = vadd.f32 %v3833_v25, %v561_v45  ;;  %v3180_v49 = vpop.f32.mrb[14].mxu0  ;;  %v3318_v45 = vld [vmem:[#allocation8 + $0x30] sm:$0xff]  }
 0x19d   : > { %1088 = vmatprep.mubr.bf16.mxu1 %v3559_v18  ;;  %1201 = vmatprep.mubr.bf16.mxu0 %v3559_v18  ;;  %v590_v53 = vmax.f32 %v570_v44, 0.0  ;;  %v573_v54 = vadd.f32 %v3180_v49, %v3833_v25  ;;  %v564_v55 = vpop.f32.mrb[15].mxu0  ;;  %v3325_v44 = vld [vmem:[#allocation8 + $0xf0] sm:$0xff]   ;;  %v3328_v49 = vld [vmem:[#allocation8 + $0xb8] sm:$0xff]  }
 0x19e   : > { %1261 = vmatpush1.bf16.msra.mxu1 %v2777_v39  ;;  %v588_v56 = vmax.f32 %v562_v48, 0.0  ;;  %v565_v57 = vadd.f32 %v3833_v25, %v564_v55  ;;  %1373 = vmatprep.subr.bf16.mxu0 %v2780_v42  ;;  %v2793_v25 = vcombine.low %v650_v50, %v654_v51  ;;  %v3312_v39 = vld [vmem:[#allocation8 + $0x28] sm:$0xff]   ;;  %v3317_v42 = vld [vmem:[#allocation8 + $0x70] sm:$0xff]   ;;  %v3324_v48 = vld [vmem:[#allocation8 + $0x38] sm:$0xff]  }
 0x19f   : > { %v591_v59 = vmax.f32 %v573_v54, 0.0  ;;  %1262 = vmatprep.subr.bf16.mxu1 %v2786_v46  ;;  %1374 = vmatpush1.bf16.msra.mxu0 %v2779_v47  ;;  %v3326_v46 = vld [vmem:[#allocation8 + $0xb0] sm:$0xff]   ;;  %v3327_v47 = vld [vmem:[#allocation8 + $0xf8] sm:$0xff]  }
 0x1a0   : > { %v589_v0 = vmax.f32 %v565_v57, 0.0  ;;  %1375 = vmatprep.subr.bf16.mxu0 %v2788_v52 }
 0x1a1   : > { %v3875_v4 = vpack.c.bf16 %v591_v59, %v590_v53  ;;  %v3939_v53 = vld [vmem:[%s4303_s4] sm:$0xff] }
 0x1a2   : > { %v3877_v8 = vpack.c.bf16 %v589_v0, %v588_v56  ;;  %1263 = vmatpush1.bf16.msra.mxu1 %v2785_v58 }
 0x1a3   : > { %1264 = vmatprep.subr.bf16.mxu1 %v2794_v60  ;;  %1376 = vmatpush1.bf16.msra.mxu0 %v2787_v61 }
 0x1a4   : > { %1089 = vmatmul.mubr.bf16.gmra.mrb[12].mxu1 %v3851_v3  ;;  %1202 = vmatmul.mubr.bf16.gmra.mrb[28].mxu0 %v3851_v3 }
 0x1a5   : > { %1098 = vmatprep.mubr.bf16.mxu1 %v3559_v18  ;;  %1211 = vmatprep.mubr.bf16.mxu0 %v3559_v18 }
 0x1a6   : > { %1265 = vmatpush1.bf16.msra.mxu1 %v2793_v25  ;;  %1377 = vmatprep.subr.bf16.mxu0 %v2796_v9 }
 0x1a7   : > { %1266 = vmatprep.subr.bf16.mxu1 %v2802_v10  ;;  %1378 = vmatpush1.bf16.msra.mxu0 %v2795_v11 }
 0x1a8   : > { %1379 = vmatprep.subr.bf16.mxu0 %v2804_v12 }
 0x1aa   : > { %1267 = vmatpush1.bf16.msra.mxu1 %v2801_v13 }
 0x1ab   : > { %1380 = vmatpush1.bf16.msra.mxu0 %v2803_v14  ;;  %2893 = vmatprep.subr.bf16.mxu1 %v3297_v15 }
 0x1ac   : > { %1099 = vmatmul.mubr.bf16.gmra.mrb[16].mxu1 %v3865_v38  ;;  %1212 = vmatmul.mubr.bf16.gmra.mrb[32].mxu0 %v3865_v38 }
 0x1ad   : > { %1108 = vmatprep.mubr.bf16.mxu1 %v3559_v18  ;;  %1221 = vmatprep.mubr.bf16.mxu0 %v3559_v18 }
 0x1ae   : > { %2957 = vmatprep.subr.bf16.mxu0 %v3306_v16 }
 0x1b4   : > { %1109 = vmatmul.mubr.bf16.gmra.mrb[20].mxu1 %v3863_v35  ;;  %1222 = vmatmul.mubr.bf16.gmra.mrb[36].mxu0 %v3863_v35 }
 0x1b5   : > { %1118 = vmatprep.mubr.bf16.mxu1 %v3559_v18  ;;  %1231 = vmatprep.mubr.bf16.mxu0 %v3559_v18 }
 0x1bc   : > { %1119 = vmatmul.mubr.bf16.gmra.mrb[24].mxu1 %v3877_v8  ;;  %1232 = vmatmul.mubr.bf16.gmra.mrb[40].mxu0 %v3877_v8 }
 0x1bd   : > { %1128 = vmatprep.mubr.bf16.mxu1 %v3559_v18  ;;  %1241 = vmatprep.mubr.bf16.mxu0 %v3559_v18 }
 0x1c4   : > { %1129 = vmatmul.mubr.bf16.gmra.mrb[28].mxu1 %v3875_v4  ;;  %1242 = vmatmul.mubr.bf16.gmra.mrb[44].mxu0 %v3875_v4 }
 0x1c5   : > { %1284 = vmatprep.mubr.bf16.mxu1 %v3559_v18  ;;  %1397 = vmatprep.mubr.bf16.mxu0 %v3559_v18 }
 0x1cc   : > { %1285 = vmatmul.mubr.bf16.vlgmr.msra.gmra.mrb[32].mxu1 %v3841_v43  ;;  %1398 = vmatmul.mubr.bf16.vlgmr.msra.gmra.mrb[48].mxu0 %v3841_v43  ;;  %v3315_v43 = vld [vmem:[#allocation8 + $0xd8] sm:$0xff]  }
 0x1cd   : > { %1294 = vmatprep.mubr.bf16.mxu1 %v3559_v18  ;;  %1407 = vmatprep.mubr.bf16.mxu0 %v3559_v18 }
 0x1ce   : > { %2894 = vmatpush3.bf16.msra.mxu1 %v3298_v17  ;;  %2958 = vmatpush3.bf16.msra.mxu0 %v3308_v19 }
 0x1cf   : > { %2895 = vmatprep.subr.bf16.mxu1 %v3299_v20  ;;  %2959 = vmatprep.subr.bf16.mxu0 %v3309_v21 }
 0x1d2   : > { %2896 = vmatpush3.bf16.msra.mxu1 %v3300_v22  ;;  %2960 = vmatpush3.bf16.msra.mxu0 %v3310_v23 }
 0x1d3   : > { %2897 = vmatprep.subr.bf16.mxu1 %v3301_v24  ;;  %2961 = vmatprep.subr.bf16.mxu0 %v3313_v26 }
 0x1d4   : > { %1295 = vmatmul.mubr.bf16.gmra.mrb[36].mxu1 %v3839_v40  ;;  %1408 = vmatmul.mubr.bf16.gmra.mrb[52].mxu0 %v3839_v40  ;;  %v3321_v40 = vld [vmem:[#allocation8 + $0xe8] sm:$0xff]  }
 0x1d5   : > { %1304 = vmatprep.mubr.bf16.mxu1 %v3559_v18  ;;  %1417 = vmatprep.mubr.bf16.mxu0 %v3559_v18 }
 0x1d6   : > { %2898 = vmatpush3.bf16.msra.mxu1 %v3302_v27  ;;  %2962 = vmatpush3.bf16.msra.mxu0 %v3314_v28  ;;  %v3330_v28 = vld [vmem:[#allocation8 + $0x100] sm:$0xff]  }
 0x1d7   : > { %2899 = vmatprep.subr.bf16.mxu1 %v3303_v29  ;;  %2963 = vmatprep.subr.bf16.mxu0 %v3315_v43  ;;  %v3963_v29 = vld [vmem:[#allocation8 + $0x180] sm:$0xff]  }
 0x1da   : > { %2900 = vmatpush3.bf16.msra.mxu1 %v3304_v30  ;;  %2964 = vmatpush3.bf16.msra.mxu0 %v3316_v31 }
 0x1db   : > { %2901 = vmatprep.subr.bf16.mxu1 %v3305_v32  ;;  %2965 = vmatprep.subr.bf16.mxu0 %v3319_v33  ;;  %v3331_v33 = vld [vmem:[#allocation8 + $0x148] sm:$0xff]  }
 0x1dc   : > { %1305 = vmatmul.mubr.bf16.gmra.mrb[40].mxu1 %v3853_v6  ;;  %1418 = vmatmul.mubr.bf16.gmra.mrb[56].mxu0 %v3853_v6  ;;  %v3323_v6 = vld [vmem:[#allocation8 + $0x78] sm:$0xff]  }
 0x1dd   : > { %1314 = vmatprep.mubr.bf16.mxu1 %v3559_v18  ;;  %1427 = vmatprep.mubr.bf16.mxu0 %v3559_v18 }
 0x1de   : > { %2902 = vmatpush3.bf16.msra.mxu1 %v3307_v34  ;;  %2966 = vmatpush3.bf16.msra.mxu0 %v3320_v36  ;;  %v3967_v34 = vld [vmem:[#allocation8 + $0x1c8] sm:$0xff]  }
 0x1df   : > { %2903 = vmatprep.subr.bf16.mxu1 %v3311_v37  ;;  %2967 = vmatprep.subr.bf16.mxu0 %v3321_v40 }
 0x1e2   : > { %2904 = vmatpush3.bf16.msra.mxu1 %v3312_v39  ;;  %2968 = vmatpush3.bf16.msra.mxu0 %v3322_v41 }
 0x1e3   : > { %2905 = vmatprep.subr.bf16.mxu1 %v3317_v42  ;;  %2969 = vmatprep.subr.bf16.mxu0 %v3325_v44 }
 0x1e4   : > { %1315 = vmatmul.mubr.bf16.gmra.mrb[44].mxu1 %v3851_v3  ;;  %1428 = vmatmul.mubr.bf16.gmra.mrb[60].mxu0 %v3851_v3  ;;  %v3329_v3 = vld [vmem:[#allocation8 + $0x140] sm:$0xff]  }
 0x1e5   : > { %1324 = vmatprep.mubr.bf16.mxu1 %v3559_v18  ;;  %1437 = vmatprep.mubr.bf16.mxu0 %v3559_v18 }
 0x1e6   : > { %2906 = vmatpush3.bf16.msra.mxu1 %v3318_v45  ;;  %2970 = vmatpush3.bf16.msra.mxu0 %v3326_v46 }
 0x1e7   : > { %2907 = vmatprep.subr.bf16.mxu1 %v3323_v6  ;;  %2971 = vmatprep.subr.bf16.mxu0 %v3327_v47  ;;  %v3332_v47 = vld [vmem:[#allocation8 + $0x108] sm:$0xff]  }
 0x1ea   : > { %2908 = vmatpush3.bf16.msra.mxu1 %v3324_v48  ;;  %2972 = vmatpush3.bf16.msra.mxu0 %v3328_v49  ;;  %v3976_v48 = vld [vmem:[#allocation8 + $0x188] sm:$0xff]  }
 0x1eb   : > { %3021 = vmatprep.subr.bf16.mxu1 %v3329_v3 }
 0x1ec   : > { %1325 = vmatmul.mubr.bf16.gmra.mrb[48].mxu1 %v3865_v38  ;;  %1438 = vmatmul.mubr.bf16.gmra.mrb[64].mxu0 %v3865_v38  ;;  %v3929_v38 = vld [vmem:[#allocation8 + $0x1c0] sm:$0xff]  }
 0x1ed   : > { %1334 = vmatprep.mubr.bf16.mxu1 %v3559_v18  ;;  %1447 = vmatprep.mubr.bf16.mxu0 %v3559_v18 }
 0x1ee   : > { %3085 = vmatprep.subr.bf16.mxu0 %v3929_v38 }
 0x1f4   : > { %1335 = vmatmul.mubr.bf16.gmra.mrb[52].mxu1 %v3863_v35  ;;  %1448 = vmatmul.mubr.bf16.gmra.mrb[68].mxu0 %v3863_v35  ;;  %v666_v35 = vlaneseq }
 0x1f5   : > { %1344 = vmatprep.mubr.bf16.mxu1 %v3559_v18  ;;  %1457 = vmatprep.mubr.bf16.mxu0 %v3559_v18 }
 0x1f6   : > { %v3932_v50 = vshrl.u32 %v666_v35, 7 }
 0x1f8   : > { %v668_v51 = vsub.s32 0, %v3932_v50  ;;  %v676_v52 = vsub.s32 2, %v3932_v50  ;;  %v680_v54 = vsub.s32 3, %v3932_v50 }
 0x1fa   : > { %v3944_v55 = vrot.slane %v3939_v53, %v668_v51  ;;  %v3947_v56 = vrot.slane %v3939_v53, %v676_v52  ;;  %v3953_v58 = vrot.slane %v3939_v53, %v680_v54  ;;  %v3333_v52 = vld [vmem:[#allocation8 + $0x150] sm:$0xff]  }
 0x1fc   : > { %1345 = vmatmul.mubr.bf16.gmra.mrb[56].mxu1 %v3877_v8  ;;  %1458 = vmatmul.mubr.bf16.gmra.mrb[72].mxu0 %v3877_v8 }
 0x1fd   : > { %1354 = vmatprep.mubr.bf16.mxu1 %v3559_v18  ;;  %1467 = vmatprep.mubr.bf16.mxu0 %v3559_v18  ;;  %v672_v18 = vsub.s32 1, %v3932_v50 }
 0x1ff   : > { %v3950_v57 = vrot.slane %v3939_v53, %v672_v18  ;;  %v3979_v18 = vld [vmem:[#allocation8 + $0x1d0] sm:$0xff]  }
 0x204   : > { %1355 = vmatmul.mubr.bf16.gmra.mrb[60].mxu1 %v3875_v4  ;;  %1468 = vmatmul.mubr.bf16.gmra.mrb[76].mxu0 %v3875_v4 }
 0x25f   : > { %v1060_v59 = vpop.f32.mrb[0].mxu1  ;;  %v1173_v60 = vpop.f32.mrb[16].mxu0 }
 0x260   : > { %v1061_v61 = vadd.f32 %v1060_v59, %v3944_v55  ;;  %v1174_v62 = vadd.f32 %v1173_v60, %v3947_v56  ;;  %v1062_v63 = vpop.f32.mrb[1].mxu1  ;;  %v1175_v0 = vpop.f32.mrb[17].mxu0 }
 0x261   : > { %v1063_v1 = vadd.f32 %v1062_v63, %v3950_v57  ;;  %v1176_v2 = vadd.f32 %v1175_v0, %v3953_v58  ;;  %v1064_v4 = vpop.f32.mrb[2].mxu1  ;;  %v1177_v5 = vpop.f32.mrb[18].mxu0 }
 0x262   : > { %v1065_v7 = vadd.f32 %v1064_v4, %v3944_v55  ;;  %v1178_v8 = vadd.f32 %v1177_v5, %v3947_v56  ;;  %v1066_v25 = vpop.f32.mrb[3].mxu1  ;;  %v1179_v9 = vpop.f32.mrb[19].mxu0  ;;  %v1478_v12 = vmax.f32 %v1061_v61, 0.0  ;;  %v1480_v13 = vmax.f32 %v1174_v62, 0.0  ;;  %v3334_v5 = vld [vmem:[#allocation8 + $0x110] sm:$0xff]  }
 0x263   : > { %v1067_v10 = vadd.f32 %v1066_v25, %v3950_v57  ;;  %v1180_v11 = vadd.f32 %v1179_v9, %v3953_v58  ;;  %v1479_v16 = vmax.f32 %v1063_v1, 0.0  ;;  %v1481_v17 = vmax.f32 %v1176_v2, 0.0 }
 0x264   : > { %v1486_v14 = vmax.f32 %v1065_v7, 0.0  ;;  %v1488_v15 = vmax.f32 %v1178_v8, 0.0  ;;  %v3982_v7 = vld [vmem:[#allocation8 + $0x190] sm:$0xff]  }
 0x265   : > { %v1487_v19 = vmax.f32 %v1067_v10, 0.0  ;;  %v1489_v20 = vmax.f32 %v1180_v11, 0.0  ;;  %v3335_v11 = vld [vmem:[#allocation8 + $0x158] sm:$0xff]  }
 0x266   : > { %v1606_v21 = vpack.c.bf16 %v1486_v14, %v1478_v12  ;;  %v1608_v22 = vpack.c.bf16 %v1488_v15, %v1480_v13  ;;  %v3987_v12 = vld [vmem:[#allocation8 + $0x1d8] sm:$0xff]  }
 0x267   : > { %v1607_v23 = vpack.c.bf16 %v1487_v19, %v1479_v16  ;;  %v1609_v24 = vpack.c.bf16 %v1489_v20, %v1481_v17  ;;  %v1070_v26 = vpop.f32.mrb[4].mxu1  ;;  %v1183_v27 = vpop.f32.mrb[20].mxu0 }
 0x268   : > { %v1071_v43 = vadd.f32 %v1070_v26, %v3944_v55  ;;  %v1184_v30 = vadd.f32 %v1183_v27, %v3947_v56  ;;  %v1072_v31 = vpop.f32.mrb[5].mxu1  ;;  %v1185_v32 = vpop.f32.mrb[21].mxu0  ;;  %v3996_v26 = vld [vmem:[#allocation8 + $0x198] sm:$0xff]  }
 0x269   : > { %v1073_v36 = vadd.f32 %v1072_v31, %v3950_v57  ;;  %v1186_v37 = vadd.f32 %v1185_v32, %v3953_v58  ;;  %v1074_v40 = vpop.f32.mrb[6].mxu1  ;;  %v1187_v39 = vpop.f32.mrb[22].mxu0  ;;  %2221 = vmatprep.mubr.bf16.mxu1 %v1607_v23  ;;  %2318 = vmatprep.mubr.bf16.mxu0 %v1609_v24  ;;  %v3336_v24 = vld [vmem:[#allocation8 + $0x118] sm:$0xff]   ;;  %v3337_v31 = vld [vmem:[#allocation8 + $0x160] sm:$0xff]  }
 0x26a   : > { %v1075_v41 = vadd.f32 %v1074_v40, %v3944_v55  ;;  %v1188_v42 = vadd.f32 %v1187_v39, %v3947_v56  ;;  %v1076_v44 = vpop.f32.mrb[7].mxu1  ;;  %v1189_v45 = vpop.f32.mrb[23].mxu0  ;;  %2222 = vmatmul.mubr.bf16.vlgmr.msra.gmra.mrb[64].mxu1 %v1606_v21  ;;  %2319 = vmatmul.mubr.bf16.vlgmr.msra.gmra.mrb[80].mxu0 %v1608_v22  ;;  %v1494_v49 = vmax.f32 %v1071_v43, 0.0  ;;  %v1496_v3 = vmax.f32 %v1184_v30, 0.0  ;;  %v3999_v32 = vld [vmem:[#allocation8 + $0x1e0] sm:$0xff]  }
 0x26b   : > { %v1077_v46 = vadd.f32 %v1076_v44, %v3950_v57  ;;  %v1190_v6 = vadd.f32 %v1189_v45, %v3953_v58  ;;  %3022 = vmatpush3.bf16.msra.mxu1 %v3330_v28  ;;  %3086 = vmatpush3.bf16.msra.mxu0 %v3963_v29  ;;  %v1495_v54 = vmax.f32 %v1073_v36, 0.0  ;;  %v1497_v59 = vmax.f32 %v1186_v37, 0.0 }
 0x26c   : > { %v1502_v35 = vmax.f32 %v1075_v41, 0.0  ;;  %v1504_v51 = vmax.f32 %v1188_v42, 0.0  ;;  %3023 = vmatprep.subr.bf16.mxu1 %v3331_v33  ;;  %3087 = vmatprep.subr.bf16.mxu0 %v3967_v34 }
 0x26d   : > { %v1503_v60 = vmax.f32 %v1077_v46, 0.0  ;;  %v1505_v61 = vmax.f32 %v1190_v6, 0.0  ;;  %v3339_v6 = vld [vmem:[#allocation8 + $0x120] sm:$0xff]  }
 0x26e   : > { %v1614_v62 = vpack.c.bf16 %v1502_v35, %v1494_v49  ;;  %v1616_v63 = vpack.c.bf16 %v1504_v51, %v1496_v3 }
 0x26f   : > { %v1615_v0 = vpack.c.bf16 %v1503_v60, %v1495_v54  ;;  %v1617_v1 = vpack.c.bf16 %v1505_v61, %v1497_v59  ;;  %v1080_v2 = vpop.f32.mrb[8].mxu1  ;;  %v1193_v4 = vpop.f32.mrb[24].mxu0  ;;  %3024 = vmatpush3.bf16.msra.mxu1 %v3332_v47  ;;  %3088 = vmatpush3.bf16.msra.mxu0 %v3976_v48  ;;  %v4002_v47 = vld [vmem:[#allocation8 + $0x1a0] sm:$0xff]   ;;  %v4007_v54 = vld [vmem:[#allocation8 + $0x1e8] sm:$0xff]  }
 0x270   : > { %v1081_v8 = vadd.f32 %v1080_v2, %v3944_v55  ;;  %v1194_v25 = vadd.f32 %v1193_v4, %v3947_v56  ;;  %v1082_v9 = vpop.f32.mrb[9].mxu1  ;;  %v1195_v10 = vpop.f32.mrb[25].mxu0  ;;  %3025 = vmatprep.subr.bf16.mxu1 %v3333_v52  ;;  %3089 = vmatprep.subr.bf16.mxu0 %v3979_v18  ;;  %v3343_v52 = vld [vmem:[#allocation8 + $0x168] sm:$0xff]  }
 0x271   : > { %v1083_v13 = vadd.f32 %v1082_v9, %v3950_v57  ;;  %v1196_v14 = vadd.f32 %v1195_v10, %v3953_v58  ;;  %v1084_v15 = vpop.f32.mrb[10].mxu1  ;;  %v1197_v16 = vpop.f32.mrb[26].mxu0  ;;  %2229 = vmatprep.mubr.bf16.mxu1 %v1615_v0  ;;  %2326 = vmatprep.mubr.bf16.mxu0 %v1617_v1 }
 0x272   : > { %v1085_v17 = vadd.f32 %v1084_v15, %v3944_v55  ;;  %v1198_v19 = vadd.f32 %v1197_v16, %v3947_v56  ;;  %v1086_v20 = vpop.f32.mrb[11].mxu1  ;;  %v1199_v21 = vpop.f32.mrb[27].mxu0  ;;  %2230 = vmatmul.mubr.bf16.gmra.mrb[68].mxu1 %v1614_v62  ;;  %2327 = vmatmul.mubr.bf16.gmra.mrb[84].mxu0 %v1616_v63  ;;  %v1510_v27 = vmax.f32 %v1081_v8, 0.0  ;;  %v1512_v28 = vmax.f32 %v1194_v25, 0.0  ;;  %v3344_v8 = vld [vmem:[#allocation8 + $0x128] sm:$0xff]   ;;  %v4019_v15 = vld [vmem:[#allocation8 + $0x1f0] sm:$0xff]  }
 0x273   : > { %v1087_v22 = vadd.f32 %v1086_v20, %v3950_v57  ;;  %v1200_v23 = vadd.f32 %v1199_v21, %v3953_v58  ;;  %3026 = vmatpush3.bf16.msra.mxu1 %v3334_v5  ;;  %3090 = vmatpush3.bf16.msra.mxu0 %v3982_v7  ;;  %v1511_v33 = vmax.f32 %v1083_v13, 0.0  ;;  %v1513_v36 = vmax.f32 %v1196_v14, 0.0  ;;  %v4016_v25 = vld [vmem:[#allocation8 + $0x1a8] sm:$0xff]   ;;  %v3349_v14 = vld [vmem:[#allocation8 + $0x170] sm:$0xff]  }
 0x274   : > { %v1518_v43 = vmax.f32 %v1085_v17, 0.0  ;;  %v1520_v30 = vmax.f32 %v1198_v19, 0.0  ;;  %3027 = vmatprep.subr.bf16.mxu1 %v3335_v11  ;;  %3091 = vmatprep.subr.bf16.mxu0 %v3987_v12 }
 0x275   : > { %v1519_v37 = vmax.f32 %v1087_v22, 0.0  ;;  %v1521_v40 = vmax.f32 %v1200_v23, 0.0 }
 0x276   : > { %v1622_v39 = vpack.c.bf16 %v1518_v43, %v1510_v27  ;;  %v1624_v41 = vpack.c.bf16 %v1520_v30, %v1512_v28  ;;  %v3350_v43 = vld [vmem:[#allocation8 + $0x130] sm:$0xff]  }
 0x277   : > { %v1623_v42 = vpack.c.bf16 %v1519_v37, %v1511_v33  ;;  %v1625_v44 = vpack.c.bf16 %v1521_v40, %v1513_v36  ;;  %v1090_v45 = vpop.f32.mrb[12].mxu1  ;;  %v1203_v46 = vpop.f32.mrb[28].mxu0  ;;  %3028 = vmatpush3.bf16.msra.mxu1 %v3336_v24  ;;  %3092 = vmatpush3.bf16.msra.mxu0 %v3996_v26  ;;  %v4022_v30 = vld [vmem:[#allocation8 + $0x1b0] sm:$0xff]   ;;  %v3355_v40 = vld [vmem:[#allocation8 + $0x178] sm:$0xff]  }
 0x278   : > { %v1091_v49 = vadd.f32 %v1090_v45, %v3944_v55  ;;  %v1204_v3 = vadd.f32 %v1203_v46, %v3947_v56  ;;  %v1092_v35 = vpop.f32.mrb[13].mxu1  ;;  %v1205_v51 = vpop.f32.mrb[29].mxu0  ;;  %3029 = vmatprep.subr.bf16.mxu1 %v3337_v31  ;;  %3093 = vmatprep.subr.bf16.mxu0 %v3999_v32 }
 0x279   : > { %v1093_v59 = vadd.f32 %v1092_v35, %v3950_v57  ;;  %v1206_v60 = vadd.f32 %v1205_v51, %v3953_v58  ;;  %v1094_v61 = vpop.f32.mrb[14].mxu1  ;;  %v1207_v62 = vpop.f32.mrb[30].mxu0  ;;  %2237 = vmatprep.mubr.bf16.mxu1 %v1623_v42  ;;  %2334 = vmatprep.mubr.bf16.mxu0 %v1625_v44 }
 0x27a   : > { %v1095_v63 = vadd.f32 %v1094_v61, %v3944_v55  ;;  %v1208_v0 = vadd.f32 %v1207_v62, %v3947_v56  ;;  %v1096_v1 = vpop.f32.mrb[15].mxu1  ;;  %v1209_v2 = vpop.f32.mrb[31].mxu0  ;;  %2238 = vmatmul.mubr.bf16.gmra.mrb[72].mxu1 %v1622_v39  ;;  %2335 = vmatmul.mubr.bf16.gmra.mrb[88].mxu0 %v1624_v41  ;;  %v1526_v9 = vmax.f32 %v1091_v49, 0.0  ;;  %v1528_v10 = vmax.f32 %v1204_v3, 0.0  ;;  %v4027_v39 = vld [vmem:[#allocation8 + $0x1f8] sm:$0xff]  }
 0x27b   : > { %v1097_v4 = vadd.f32 %v1096_v1, %v3950_v57  ;;  %v1210_v5 = vadd.f32 %v1209_v2, %v3953_v58  ;;  %3030 = vmatpush3.bf16.msra.mxu1 %v3339_v6  ;;  %3094 = vmatpush3.bf16.msra.mxu0 %v4002_v47  ;;  %v1527_v16 = vmax.f32 %v1093_v59, 0.0  ;;  %v1529_v17 = vmax.f32 %v1206_v60, 0.0  ;;  %v4036_v59 = vld [vmem:[#allocation8 + $0x1b8] sm:$0xff]  }
 0x27c   : > { %v1534_v11 = vmax.f32 %v1095_v63, 0.0  ;;  %v1536_v13 = vmax.f32 %v1208_v0, 0.0  ;;  %3031 = vmatprep.subr.bf16.mxu1 %v3343_v52  ;;  %3095 = vmatprep.subr.bf16.mxu0 %v4007_v54  ;;  %v3356_v52 = vld [vmem:[#allocation8 + $0x138] sm:$0xff]  }
 0x27d   : > { %v1535_v19 = vmax.f32 %v1097_v4, 0.0  ;;  %v1537_v20 = vmax.f32 %v1210_v5, 0.0 }
 0x27e   : > { %v1630_v21 = vpack.c.bf16 %v1534_v11, %v1526_v9  ;;  %v1632_v22 = vpack.c.bf16 %v1536_v13, %v1528_v10 }
 0x27f   : > { %v1631_v23 = vpack.c.bf16 %v1535_v19, %v1527_v16  ;;  %v1633_v24 = vpack.c.bf16 %v1537_v20, %v1529_v17  ;;  %v1100_v27 = vpop.f32.mrb[16].mxu1  ;;  %v1213_v28 = vpop.f32.mrb[32].mxu0  ;;  %3032 = vmatpush3.bf16.msra.mxu1 %v3344_v8  ;;  %3096 = vmatpush3.bf16.msra.mxu0 %v4016_v25 }
 0x280   : > { %v1101_v31 = vadd.f32 %v1100_v27, %v3944_v55  ;;  %v1214_v33 = vadd.f32 %v1213_v28, %v3947_v56  ;;  %v1102_v36 = vpop.f32.mrb[17].mxu1  ;;  %v1215_v37 = vpop.f32.mrb[33].mxu0  ;;  %3033 = vmatprep.subr.bf16.mxu1 %v3349_v14  ;;  %3097 = vmatprep.subr.bf16.mxu0 %v4019_v15 }
 0x281   : > { %v1103_v41 = vadd.f32 %v1102_v36, %v3950_v57  ;;  %v1216_v42 = vadd.f32 %v1215_v37, %v3953_v58  ;;  %v1104_v44 = vpop.f32.mrb[18].mxu1  ;;  %v1217_v45 = vpop.f32.mrb[34].mxu0  ;;  %2245 = vmatprep.mubr.bf16.mxu1 %v1631_v23  ;;  %2342 = vmatprep.mubr.bf16.mxu0 %v1633_v24 }
 0x282   : > { %v1105_v46 = vadd.f32 %v1104_v44, %v3944_v55  ;;  %v1218_v6 = vadd.f32 %v1217_v45, %v3947_v56  ;;  %v1106_v49 = vpop.f32.mrb[19].mxu1  ;;  %v1219_v3 = vpop.f32.mrb[35].mxu0  ;;  %2246 = vmatmul.mubr.bf16.gmra.mrb[76].mxu1 %v1630_v21  ;;  %2343 = vmatmul.mubr.bf16.gmra.mrb[92].mxu0 %v1632_v22  ;;  %v1542_v60 = vmax.f32 %v1101_v31, 0.0  ;;  %v1544_v61 = vmax.f32 %v1214_v33, 0.0 }
 0x283   : > { %v1107_v35 = vadd.f32 %v1106_v49, %v3950_v57  ;;  %v1220_v51 = vadd.f32 %v1219_v3, %v3953_v58  ;;  %3034 = vmatpush3.bf16.msra.mxu1 %v3350_v43  ;;  %3098 = vmatpush3.bf16.msra.mxu0 %v4022_v30  ;;  %v1543_v0 = vmax.f32 %v1103_v41, 0.0  ;;  %v1545_v1 = vmax.f32 %v1216_v42, 0.0 }
 0x284   : > { %v1550_v62 = vmax.f32 %v1105_v46, 0.0  ;;  %v1552_v63 = vmax.f32 %v1218_v6, 0.0  ;;  %3035 = vmatprep.subr.bf16.mxu1 %v3355_v40  ;;  %3099 = vmatprep.subr.bf16.mxu0 %v4027_v39 }
 0x285   : > { %v1551_v2 = vmax.f32 %v1107_v35, 0.0  ;;  %v1553_v4 = vmax.f32 %v1220_v51, 0.0 }
 0x286   : > { %v1638_v5 = vpack.c.bf16 %v1550_v62, %v1542_v60  ;;  %v1640_v8 = vpack.c.bf16 %v1552_v63, %v1544_v61 }
 0x287   : > { %v1639_v9 = vpack.c.bf16 %v1551_v2, %v1543_v0  ;;  %v1641_v10 = vpack.c.bf16 %v1553_v4, %v1545_v1  ;;  %v1110_v11 = vpop.f32.mrb[20].mxu1  ;;  %v1223_v13 = vpop.f32.mrb[36].mxu0  ;;  %3036 = vmatpush3.bf16.msra.mxu1 %v3356_v52  ;;  %3100 = vmatpush3.bf16.msra.mxu0 %v4036_v59 }
 0x288   : > { %v1111_v14 = vadd.f32 %v1110_v11, %v3944_v55  ;;  %v1224_v16 = vadd.f32 %v1223_v13, %v3947_v56  ;;  %v1112_v17 = vpop.f32.mrb[21].mxu1  ;;  %v1225_v19 = vpop.f32.mrb[37].mxu0  ;;  %3181 = vmatprep.subr.bf16.mxu1 %v3929_v38  ;;  %v684_v13 = vsub.s32 4, %v3932_v50 }
 0x289   : > { %v1113_v20 = vadd.f32 %v1112_v17, %v3950_v57  ;;  %v1226_v21 = vadd.f32 %v1225_v19, %v3953_v58  ;;  %v1114_v22 = vpop.f32.mrb[22].mxu1  ;;  %v1227_v23 = vpop.f32.mrb[38].mxu0  ;;  %2253 = vmatprep.mubr.bf16.mxu1 %v1639_v9  ;;  %2350 = vmatprep.mubr.bf16.mxu0 %v1641_v10 }
 0x28a   : > { %v1115_v24 = vadd.f32 %v1114_v22, %v3944_v55  ;;  %v1228_v27 = vadd.f32 %v1227_v23, %v3947_v56  ;;  %v1116_v28 = vpop.f32.mrb[23].mxu1  ;;  %v1229_v43 = vpop.f32.mrb[39].mxu0  ;;  %2254 = vmatmul.mubr.bf16.gmra.mrb[80].mxu1 %v1638_v5  ;;  %2351 = vmatmul.mubr.bf16.gmra.mrb[96].mxu0 %v1640_v8  ;;  %v1558_v33 = vmax.f32 %v1111_v14, 0.0  ;;  %v1560_v36 = vmax.f32 %v1224_v16, 0.0 }
 0x28b   : > { %v1117_v31 = vadd.f32 %v1116_v28, %v3950_v57  ;;  %v1230_v38 = vadd.f32 %v1229_v43, %v3953_v58  ;;  %v1559_v41 = vmax.f32 %v1113_v20, 0.0  ;;  %v1561_v42 = vmax.f32 %v1226_v21, 0.0 }
 0x28c   : > { %v1566_v37 = vmax.f32 %v1115_v24, 0.0  ;;  %v1568_v40 = vmax.f32 %v1228_v27, 0.0  ;;  %v692_v28 = vsub.s32 6, %v3932_v50 }
 0x28d   : > { %v1567_v44 = vmax.f32 %v1117_v31, 0.0  ;;  %v1569_v45 = vmax.f32 %v1230_v38, 0.0 }
 0x28e   : > { %v1646_v46 = vpack.c.bf16 %v1566_v37, %v1558_v33  ;;  %v1648_v6 = vpack.c.bf16 %v1568_v40, %v1560_v36  ;;  %v688_v36 = vsub.s32 5, %v3932_v50  ;;  %v696_v37 = vsub.s32 7, %v3932_v50 }
 0x28f   : > { %v1647_v49 = vpack.c.bf16 %v1567_v44, %v1559_v41  ;;  %v1649_v3 = vpack.c.bf16 %v1569_v45, %v1561_v42  ;;  %v1120_v35 = vpop.f32.mrb[24].mxu1  ;;  %v1233_v51 = vpop.f32.mrb[40].mxu0 }
 0x290   : > { %v1121_v52 = vadd.f32 %v1120_v35, %v3944_v55  ;;  %v1234_v60 = vadd.f32 %v1233_v51, %v3947_v56  ;;  %v1122_v61 = vpop.f32.mrb[25].mxu1  ;;  %v1235_v62 = vpop.f32.mrb[41].mxu0 }
 0x291   : > { %v1123_v63 = vadd.f32 %v1122_v61, %v3950_v57  ;;  %v1236_v0 = vadd.f32 %v1235_v62, %v3953_v58  ;;  %v1124_v1 = vpop.f32.mrb[26].mxu1  ;;  %v1237_v2 = vpop.f32.mrb[42].mxu0  ;;  %2261 = vmatprep.mubr.bf16.mxu1 %v1647_v49  ;;  %2358 = vmatprep.mubr.bf16.mxu0 %v1649_v3  ;;  %v4066_v3 = vrot.slane %v3939_v53, %v684_v13 }
 0x292   : > { %v1125_v4 = vadd.f32 %v1124_v1, %v3944_v55  ;;  %v1238_v5 = vadd.f32 %v1237_v2, %v3947_v56  ;;  %v1126_v8 = vpop.f32.mrb[27].mxu1  ;;  %v1239_v9 = vpop.f32.mrb[43].mxu0  ;;  %2262 = vmatmul.mubr.bf16.gmra.mrb[84].mxu1 %v1646_v46  ;;  %2359 = vmatmul.mubr.bf16.gmra.mrb[100].mxu0 %v1648_v6  ;;  %v1574_v14 = vmax.f32 %v1121_v52, 0.0  ;;  %v1576_v16 = vmax.f32 %v1234_v60, 0.0 }
 0x293   : > { %v1127_v10 = vadd.f32 %v1126_v8, %v3950_v57  ;;  %v1240_v11 = vadd.f32 %v1239_v9, %v3953_v58  ;;  %v1575_v20 = vmax.f32 %v1123_v63, 0.0  ;;  %v1577_v21 = vmax.f32 %v1236_v0, 0.0 }
 0x294   : > { %v1582_v17 = vmax.f32 %v1125_v4, 0.0  ;;  %v1584_v19 = vmax.f32 %v1238_v5, 0.0  ;;  %v4071_v60 = vrot.slane %v3939_v53, %v692_v28  ;;  %v4076_v63 = vrot.slane %v3939_v53, %v688_v36 }
 0x295   : > { %v1583_v22 = vmax.f32 %v1127_v10, 0.0  ;;  %v1585_v23 = vmax.f32 %v1240_v11, 0.0  ;;  %v4079_v0 = vrot.slane %v3939_v53, %v696_v37 }
 0x296   : > { %v1654_v24 = vpack.c.bf16 %v1582_v17, %v1574_v14  ;;  %v1656_v27 = vpack.c.bf16 %v1584_v19, %v1576_v16 }
 0x297   : > { %v1655_v43 = vpack.c.bf16 %v1583_v22, %v1575_v20  ;;  %v1657_v31 = vpack.c.bf16 %v1585_v23, %v1577_v21  ;;  %v1130_v38 = vpop.f32.mrb[28].mxu1  ;;  %v1243_v33 = vpop.f32.mrb[44].mxu0 }
 0x298   : > { %v1131_v40 = vadd.f32 %v1130_v38, %v3944_v55  ;;  %v1244_v41 = vadd.f32 %v1243_v33, %v3947_v56  ;;  %v1132_v42 = vpop.f32.mrb[29].mxu1  ;;  %v1245_v44 = vpop.f32.mrb[45].mxu0 }
 0x299   : > { %v1133_v45 = vadd.f32 %v1132_v42, %v3950_v57  ;;  %v1246_v46 = vadd.f32 %v1245_v44, %v3953_v58  ;;  %v1134_v6 = vpop.f32.mrb[30].mxu1  ;;  %v1247_v49 = vpop.f32.mrb[46].mxu0  ;;  %2269 = vmatprep.mubr.bf16.mxu1 %v1655_v43  ;;  %2366 = vmatprep.mubr.bf16.mxu0 %v1657_v31 }
 0x29a   : > { %v1135_v35 = vadd.f32 %v1134_v6, %v3944_v55  ;;  %v1248_v50 = vadd.f32 %v1247_v49, %v3947_v56  ;;  %v1136_v51 = vpop.f32.mrb[31].mxu1  ;;  %v1249_v52 = vpop.f32.mrb[47].mxu0  ;;  %2270 = vmatmul.mubr.bf16.gmra.mrb[88].mxu1 %v1654_v24  ;;  %2367 = vmatmul.mubr.bf16.gmra.mrb[104].mxu0 %v1656_v27  ;;  %v1590_v55 = vmax.f32 %v1131_v40, 0.0  ;;  %v1592_v1 = vmax.f32 %v1244_v41, 0.0 }
 0x29b   : > { %v1137_v61 = vadd.f32 %v1136_v51, %v3950_v57  ;;  %v1250_v62 = vadd.f32 %v1249_v52, %v3953_v58  ;;  %v1591_v4 = vmax.f32 %v1133_v45, 0.0  ;;  %v1593_v5 = vmax.f32 %v1246_v46, 0.0 }
 0x29c   : > { %v1598_v56 = vmax.f32 %v1135_v35, 0.0  ;;  %v1600_v2 = vmax.f32 %v1248_v50, 0.0 }
 0x29d   : > { %v1599_v8 = vmax.f32 %v1137_v61, 0.0  ;;  %v1601_v9 = vmax.f32 %v1250_v62, 0.0 }
 0x29e   : > { %v1662_v10 = vpack.c.bf16 %v1598_v56, %v1590_v55  ;;  %v1664_v11 = vpack.c.bf16 %v1600_v2, %v1592_v1 }
 0x29f   : > { %v1663_v13 = vpack.c.bf16 %v1599_v8, %v1591_v4  ;;  %v1665_v57 = vpack.c.bf16 %v1601_v9, %v1593_v5  ;;  %v1286_v14 = vpop.f32.mrb[32].mxu1  ;;  %v1399_v58 = vpop.f32.mrb[48].mxu0 }
 0x2a0   : > { %v1287_v16 = vadd.f32 %v1286_v14, %v4066_v3  ;;  %v1400_v17 = vadd.f32 %v1399_v58, %v4071_v60  ;;  %v1288_v53 = vpop.f32.mrb[33].mxu1  ;;  %v1401_v19 = vpop.f32.mrb[49].mxu0 }
 0x2a1   : > { %v1289_v20 = vadd.f32 %v1288_v53, %v4076_v63  ;;  %v1402_v21 = vadd.f32 %v1401_v19, %v4079_v0  ;;  %v1290_v22 = vpop.f32.mrb[34].mxu1  ;;  %v1403_v23 = vpop.f32.mrb[50].mxu0  ;;  %2277 = vmatprep.mubr.bf16.mxu1 %v1663_v13  ;;  %2374 = vmatprep.mubr.bf16.mxu0 %v1665_v57 }
 0x2a2   : > { %v1291_v24 = vadd.f32 %v1290_v22, %v4066_v3  ;;  %v1404_v27 = vadd.f32 %v1403_v23, %v4071_v60  ;;  %v1292_v28 = vpop.f32.mrb[35].mxu1  ;;  %v1405_v43 = vpop.f32.mrb[51].mxu0  ;;  %2278 = vmatmul.mubr.bf16.gmra.mrb[92].mxu1 %v1662_v10  ;;  %2375 = vmatmul.mubr.bf16.gmra.mrb[108].mxu0 %v1664_v11  ;;  %v1482_v33 = vmax.f32 %v1287_v16, 0.0  ;;  %v1484_v36 = vmax.f32 %v1400_v17, 0.0 }
 0x2a3   : > { %v1293_v31 = vadd.f32 %v1292_v28, %v4076_v63  ;;  %v1406_v38 = vadd.f32 %v1405_v43, %v4079_v0  ;;  %v1483_v41 = vmax.f32 %v1289_v20, 0.0  ;;  %v1485_v42 = vmax.f32 %v1402_v21, 0.0 }
 0x2a4   : > { %v1490_v37 = vmax.f32 %v1291_v24, 0.0  ;;  %v1492_v40 = vmax.f32 %v1404_v27, 0.0 }
 0x2a5   : > { %v1491_v44 = vmax.f32 %v1293_v31, 0.0  ;;  %v1493_v45 = vmax.f32 %v1406_v38, 0.0 }
 0x2a6   : > { %v1610_v46 = vpack.c.bf16 %v1490_v37, %v1482_v33  ;;  %v1612_v6 = vpack.c.bf16 %v1492_v40, %v1484_v36 }
 0x2a7   : > { %v1611_v49 = vpack.c.bf16 %v1491_v44, %v1483_v41  ;;  %v1613_v35 = vpack.c.bf16 %v1493_v45, %v1485_v42  ;;  %v1296_v50 = vpop.f32.mrb[36].mxu1  ;;  %v1409_v51 = vpop.f32.mrb[52].mxu0 }
 0x2a8   : > { %v1297_v52 = vadd.f32 %v1296_v50, %v4066_v3  ;;  %v1410_v61 = vadd.f32 %v1409_v51, %v4071_v60  ;;  %v1298_v62 = vpop.f32.mrb[37].mxu1  ;;  %v1411_v55 = vpop.f32.mrb[53].mxu0 }
 0x2a9   : > { %v1299_v1 = vadd.f32 %v1298_v62, %v4076_v63  ;;  %v1412_v56 = vadd.f32 %v1411_v55, %v4079_v0  ;;  %v1300_v2 = vpop.f32.mrb[38].mxu1  ;;  %v1413_v4 = vpop.f32.mrb[54].mxu0  ;;  %2415 = vmatprep.mubr.bf16.mxu1 %v1611_v49  ;;  %2512 = vmatprep.mubr.bf16.mxu0 %v1613_v35 }
 0x2aa   : > { %v1301_v5 = vadd.f32 %v1300_v2, %v4066_v3  ;;  %v1414_v8 = vadd.f32 %v1413_v4, %v4071_v60  ;;  %v1302_v9 = vpop.f32.mrb[39].mxu1  ;;  %v1415_v10 = vpop.f32.mrb[55].mxu0  ;;  %2416 = vmatmul.mubr.bf16.vlgmr.msra.gmra.mrb[96].mxu1 %v1610_v46  ;;  %2513 = vmatmul.mubr.bf16.vlgmr.msra.gmra.mrb[112].mxu0 %v1612_v6  ;;  %v1498_v57 = vmax.f32 %v1297_v52, 0.0  ;;  %v1500_v14 = vmax.f32 %v1410_v61, 0.0 }
 0x2ab   : > { %v1303_v11 = vadd.f32 %v1302_v9, %v4076_v63  ;;  %v1416_v13 = vadd.f32 %v1415_v10, %v4079_v0  ;;  %3189 = vmatpush3.bf16.msra.mxu1 %v3963_v29  ;;  %v1499_v17 = vmax.f32 %v1299_v1, 0.0  ;;  %v1501_v53 = vmax.f32 %v1412_v56, 0.0 }
 0x2ac   : > { %v1506_v58 = vmax.f32 %v1301_v5, 0.0  ;;  %v1508_v16 = vmax.f32 %v1414_v8, 0.0  ;;  %3182 = vmatprep.subr.bf16.mxu1 %v3967_v34 }
 0x2ad   : > { %v1507_v19 = vmax.f32 %v1303_v11, 0.0  ;;  %v1509_v20 = vmax.f32 %v1416_v13, 0.0 }
 0x2ae   : > { %v1618_v21 = vpack.c.bf16 %v1506_v58, %v1498_v57  ;;  %v1620_v22 = vpack.c.bf16 %v1508_v16, %v1500_v14 }
 0x2af   : > { %v1619_v23 = vpack.c.bf16 %v1507_v19, %v1499_v17  ;;  %v1621_v24 = vpack.c.bf16 %v1509_v20, %v1501_v53  ;;  %v1306_v27 = vpop.f32.mrb[40].mxu1  ;;  %v1419_v28 = vpop.f32.mrb[56].mxu0  ;;  %3190 = vmatpush3.bf16.msra.mxu1 %v3976_v48 }
 0x2b0   : > { %v1307_v29 = vadd.f32 %v1306_v27, %v4066_v3  ;;  %v1420_v43 = vadd.f32 %v1419_v28, %v4071_v60  ;;  %v1308_v31 = vpop.f32.mrb[41].mxu1  ;;  %v1421_v38 = vpop.f32.mrb[57].mxu0  ;;  %3183 = vmatprep.subr.bf16.mxu1 %v3979_v18 }
 0x2b1   : > { %v1309_v34 = vadd.f32 %v1308_v31, %v4076_v63  ;;  %v1422_v33 = vadd.f32 %v1421_v38, %v4079_v0  ;;  %v1310_v36 = vpop.f32.mrb[42].mxu1  ;;  %v1423_v37 = vpop.f32.mrb[58].mxu0  ;;  %2423 = vmatprep.mubr.bf16.mxu1 %v1619_v23  ;;  %2520 = vmatprep.mubr.bf16.mxu0 %v1621_v24 }
 0x2b2   : > { %v1311_v40 = vadd.f32 %v1310_v36, %v4066_v3  ;;  %v1424_v48 = vadd.f32 %v1423_v37, %v4071_v60  ;;  %v1312_v41 = vpop.f32.mrb[43].mxu1  ;;  %v1425_v42 = vpop.f32.mrb[59].mxu0  ;;  %2424 = vmatmul.mubr.bf16.gmra.mrb[100].mxu1 %v1618_v21  ;;  %2521 = vmatmul.mubr.bf16.gmra.mrb[116].mxu0 %v1620_v22  ;;  %v1514_v45 = vmax.f32 %v1307_v29, 0.0  ;;  %v1516_v46 = vmax.f32 %v1420_v43, 0.0 }
 0x2b3   : > { %v1313_v44 = vadd.f32 %v1312_v41, %v4076_v63  ;;  %v1426_v18 = vadd.f32 %v1425_v42, %v4079_v0  ;;  %3191 = vmatpush3.bf16.msra.mxu1 %v3982_v7  ;;  %v1515_v35 = vmax.f32 %v1309_v34, 0.0  ;;  %v1517_v50 = vmax.f32 %v1422_v33, 0.0 }
 0x2b4   : > { %v1522_v6 = vmax.f32 %v1311_v40, 0.0  ;;  %v1524_v49 = vmax.f32 %v1424_v48, 0.0  ;;  %3184 = vmatprep.subr.bf16.mxu1 %v3987_v12 }
 0x2b5   : > { %v1523_v51 = vmax.f32 %v1313_v44, 0.0  ;;  %v1525_v52 = vmax.f32 %v1426_v18, 0.0 }
 0x2b6   : > { %v1626_v61 = vpack.c.bf16 %v1522_v6, %v1514_v45  ;;  %v1628_v62 = vpack.c.bf16 %v1524_v49, %v1516_v46 }
 0x2b7   : > { %v1627_v55 = vpack.c.bf16 %v1523_v51, %v1515_v35  ;;  %v1629_v1 = vpack.c.bf16 %v1525_v52, %v1517_v50  ;;  %v1316_v56 = vpop.f32.mrb[44].mxu1  ;;  %v1429_v2 = vpop.f32.mrb[60].mxu0  ;;  %3192 = vmatpush3.bf16.msra.mxu1 %v3996_v26 }
 0x2b8   : > { %v1317_v7 = vadd.f32 %v1316_v56, %v4066_v3  ;;  %v1430_v4 = vadd.f32 %v1429_v2, %v4071_v60  ;;  %v1318_v5 = vpop.f32.mrb[45].mxu1  ;;  %v1431_v8 = vpop.f32.mrb[61].mxu0  ;;  %3185 = vmatprep.subr.bf16.mxu1 %v3999_v32 }
 0x2b9   : > { %v1319_v12 = vadd.f32 %v1318_v5, %v4076_v63  ;;  %v1432_v9 = vadd.f32 %v1431_v8, %v4079_v0  ;;  %v1320_v10 = vpop.f32.mrb[46].mxu1  ;;  %v1433_v11 = vpop.f32.mrb[62].mxu0  ;;  %2431 = vmatprep.mubr.bf16.mxu1 %v1627_v55  ;;  %2528 = vmatprep.mubr.bf16.mxu0 %v1629_v1 }
 0x2ba   : > { %v1321_v13 = vadd.f32 %v1320_v10, %v4066_v3  ;;  %v1434_v26 = vadd.f32 %v1433_v11, %v4071_v60  ;;  %v1322_v57 = vpop.f32.mrb[47].mxu1  ;;  %v1435_v14 = vpop.f32.mrb[63].mxu0  ;;  %2432 = vmatmul.mubr.bf16.gmra.mrb[104].mxu1 %v1626_v61  ;;  %2529 = vmatmul.mubr.bf16.gmra.mrb[120].mxu0 %v1628_v62  ;;  %v1530_v16 = vmax.f32 %v1317_v7, 0.0  ;;  %v1532_v17 = vmax.f32 %v1430_v4, 0.0 }
 0x2bb   : > { %v1323_v58 = vadd.f32 %v1322_v57, %v4076_v63  ;;  %v1436_v32 = vadd.f32 %v1435_v14, %v4079_v0  ;;  %3193 = vmatpush3.bf16.msra.mxu1 %v4002_v47  ;;  %v1531_v20 = vmax.f32 %v1319_v12, 0.0  ;;  %v1533_v21 = vmax.f32 %v1432_v9, 0.0 }
 0x2bc   : > { %v1538_v53 = vmax.f32 %v1321_v13, 0.0  ;;  %v1540_v19 = vmax.f32 %v1434_v26, 0.0  ;;  %3186 = vmatprep.subr.bf16.mxu1 %v4007_v54 }
 0x2bd   : > { %v1539_v22 = vmax.f32 %v1323_v58, 0.0  ;;  %v1541_v23 = vmax.f32 %v1436_v32, 0.0 }
 0x2be   : > { %v1634_v24 = vpack.c.bf16 %v1538_v53, %v1530_v16  ;;  %v1636_v27 = vpack.c.bf16 %v1540_v19, %v1532_v17 }
 0x2bf   : > { %v1635_v28 = vpack.c.bf16 %v1539_v22, %v1531_v20  ;;  %v1637_v29 = vpack.c.bf16 %v1541_v23, %v1533_v21  ;;  %v1326_v43 = vpop.f32.mrb[48].mxu1  ;;  %v1439_v31 = vpop.f32.mrb[64].mxu0  ;;  %3194 = vmatpush3.bf16.msra.mxu1 %v4016_v25 }
 0x2c0   : > { %v1327_v47 = vadd.f32 %v1326_v43, %v4066_v3  ;;  %v1440_v38 = vadd.f32 %v1439_v31, %v4071_v60  ;;  %v1328_v34 = vpop.f32.mrb[49].mxu1  ;;  %v1441_v33 = vpop.f32.mrb[65].mxu0  ;;  %3187 = vmatprep.subr.bf16.mxu1 %v4019_v15 }
 0x2c1   : > { %v1329_v54 = vadd.f32 %v1328_v34, %v4076_v63  ;;  %v1442_v36 = vadd.f32 %v1441_v33, %v4079_v0  ;;  %v1330_v37 = vpop.f32.mrb[50].mxu1  ;;  %v1443_v40 = vpop.f32.mrb[66].mxu0  ;;  %2439 = vmatprep.mubr.bf16.mxu1 %v1635_v28  ;;  %2536 = vmatprep.mubr.bf16.mxu0 %v1637_v29 }
 0x2c2   : > { %v1331_v48 = vadd.f32 %v1330_v37, %v4066_v3  ;;  %v1444_v25 = vadd.f32 %v1443_v40, %v4071_v60  ;;  %v1332_v41 = vpop.f32.mrb[51].mxu1  ;;  %v1445_v42 = vpop.f32.mrb[67].mxu0  ;;  %2440 = vmatmul.mubr.bf16.gmra.mrb[108].mxu1 %v1634_v24  ;;  %2537 = vmatmul.mubr.bf16.gmra.mrb[124].mxu0 %v1636_v27  ;;  %v1546_v18 = vmax.f32 %v1327_v47, 0.0  ;;  %v1548_v45 = vmax.f32 %v1440_v38, 0.0 }
 0x2c3   : > { %v1333_v44 = vadd.f32 %v1332_v41, %v4076_v63  ;;  %v1446_v15 = vadd.f32 %v1445_v42, %v4079_v0  ;;  %3195 = vmatpush3.bf16.msra.mxu1 %v4022_v30  ;;  %v1547_v49 = vmax.f32 %v1329_v54, 0.0  ;;  %v1549_v35 = vmax.f32 %v1442_v36, 0.0 }
 0x2c4   : > { %v1554_v46 = vmax.f32 %v1331_v48, 0.0  ;;  %v1556_v6 = vmax.f32 %v1444_v25, 0.0  ;;  %3188 = vmatprep.subr.bf16.mxu1 %v4027_v39 }
 0x2c5   : > { %v1555_v50 = vmax.f32 %v1333_v44, 0.0  ;;  %v1557_v51 = vmax.f32 %v1446_v15, 0.0 }
 0x2c6   : > { %v1642_v52 = vpack.c.bf16 %v1554_v46, %v1546_v18  ;;  %v1644_v61 = vpack.c.bf16 %v1556_v6, %v1548_v45 }
 0x2c7   : > { %v1643_v62 = vpack.c.bf16 %v1555_v50, %v1547_v49  ;;  %v1645_v55 = vpack.c.bf16 %v1557_v51, %v1549_v35  ;;  %v1336_v1 = vpop.f32.mrb[52].mxu1  ;;  %v1449_v56 = vpop.f32.mrb[68].mxu0  ;;  %3196 = vmatpush3.bf16.msra.mxu1 %v4036_v59 }
 0x2c8   : > { %v1337_v30 = vadd.f32 %v1336_v1, %v4066_v3  ;;  %v1450_v2 = vadd.f32 %v1449_v56, %v4071_v60  ;;  %v1338_v7 = vpop.f32.mrb[53].mxu1  ;;  %v1451_v4 = vpop.f32.mrb[69].mxu0 }
 0x2c9   : > { %v1339_v39 = vadd.f32 %v1338_v7, %v4076_v63  ;;  %v1452_v5 = vadd.f32 %v1451_v4, %v4079_v0  ;;  %v1340_v8 = vpop.f32.mrb[54].mxu1  ;;  %v1453_v12 = vpop.f32.mrb[70].mxu0  ;;  %2447 = vmatprep.mubr.bf16.mxu1 %v1643_v62  ;;  %2544 = vmatprep.mubr.bf16.mxu0 %v1645_v55 }
 0x2ca   : > { %v1341_v9 = vadd.f32 %v1340_v8, %v4066_v3  ;;  %v1454_v10 = vadd.f32 %v1453_v12, %v4071_v60  ;;  %v1342_v11 = vpop.f32.mrb[55].mxu1  ;;  %v1455_v59 = vpop.f32.mrb[71].mxu0  ;;  %2448 = vmatmul.mubr.bf16.gmra.mrb[112].mxu1 %v1642_v52  ;;  %2545 = vmatmul.mubr.bf16.gmra.mrb[128].mxu0 %v1644_v61  ;;  %v1562_v57 = vmax.f32 %v1337_v30, 0.0  ;;  %v1564_v14 = vmax.f32 %v1450_v2, 0.0 }
 0x2cb   : > { %v1343_v13 = vadd.f32 %v1342_v11, %v4076_v63  ;;  %v1456_v26 = vadd.f32 %v1455_v59, %v4079_v0  ;;  %v1563_v16 = vmax.f32 %v1339_v39, 0.0  ;;  %v1565_v17 = vmax.f32 %v1452_v5, 0.0 }
 0x2cc   : > { %v1570_v58 = vmax.f32 %v1341_v9, 0.0  ;;  %v1572_v32 = vmax.f32 %v1454_v10, 0.0 }
 0x2cd   : > { %v1571_v53 = vmax.f32 %v1343_v13, 0.0  ;;  %v1573_v19 = vmax.f32 %v1456_v26, 0.0 }
 0x2ce   : > { %v1650_v20 = vpack.c.bf16 %v1570_v58, %v1562_v57  ;;  %v1652_v21 = vpack.c.bf16 %v1572_v32, %v1564_v14 }
 0x2cf   : > { %v1651_v22 = vpack.c.bf16 %v1571_v53, %v1563_v16  ;;  %v1653_v23 = vpack.c.bf16 %v1573_v19, %v1565_v17  ;;  %v1346_v24 = vpop.f32.mrb[56].mxu1  ;;  %v1459_v27 = vpop.f32.mrb[72].mxu0 }
 0x2d0   : > { %v1347_v28 = vadd.f32 %v1346_v24, %v4066_v3  ;;  %v1460_v29 = vadd.f32 %v1459_v27, %v4071_v60  ;;  %v1348_v43 = vpop.f32.mrb[57].mxu1  ;;  %v1461_v31 = vpop.f32.mrb[73].mxu0 }
 0x2d1   : > { %v1349_v47 = vadd.f32 %v1348_v43, %v4076_v63  ;;  %v1462_v38 = vadd.f32 %v1461_v31, %v4079_v0  ;;  %v1350_v34 = vpop.f32.mrb[58].mxu1  ;;  %v1463_v33 = vpop.f32.mrb[74].mxu0  ;;  %2455 = vmatprep.mubr.bf16.mxu1 %v1651_v22  ;;  %2552 = vmatprep.mubr.bf16.mxu0 %v1653_v23 }
 0x2d2   : > { %v1351_v54 = vadd.f32 %v1350_v34, %v4066_v3  ;;  %v1464_v36 = vadd.f32 %v1463_v33, %v4071_v60  ;;  %v1352_v37 = vpop.f32.mrb[59].mxu1  ;;  %v1465_v40 = vpop.f32.mrb[75].mxu0  ;;  %2456 = vmatmul.mubr.bf16.gmra.mrb[116].mxu1 %v1650_v20  ;;  %2553 = vmatmul.mubr.bf16.gmra.mrb[132].mxu0 %v1652_v21  ;;  %v1578_v41 = vmax.f32 %v1347_v28, 0.0  ;;  %v1580_v42 = vmax.f32 %v1460_v29, 0.0 }
 0x2d3   : > { %v1353_v48 = vadd.f32 %v1352_v37, %v4076_v63  ;;  %v1466_v25 = vadd.f32 %v1465_v40, %v4079_v0  ;;  %v1579_v18 = vmax.f32 %v1349_v47, 0.0  ;;  %v1581_v45 = vmax.f32 %v1462_v38, 0.0 }
 0x2d4   : > { %v1586_v44 = vmax.f32 %v1351_v54, 0.0  ;;  %v1588_v15 = vmax.f32 %v1464_v36, 0.0 }
 0x2d5   : > { %v1587_v46 = vmax.f32 %v1353_v48, 0.0  ;;  %v1589_v6 = vmax.f32 %v1466_v25, 0.0 }
 0x2d6   : > { %v1658_v49 = vpack.c.bf16 %v1586_v44, %v1578_v41  ;;  %v1660_v35 = vpack.c.bf16 %v1588_v15, %v1580_v42 }
 0x2d7   : > { %v1659_v50 = vpack.c.bf16 %v1587_v46, %v1579_v18  ;;  %v1661_v51 = vpack.c.bf16 %v1589_v6, %v1581_v45  ;;  %v1356_v52 = vpop.f32.mrb[60].mxu1  ;;  %v1469_v61 = vpop.f32.mrb[76].mxu0 }
 0x2d8   : > { %v1357_v62 = vadd.f32 %v1356_v52, %v4066_v3  ;;  %v1470_v55 = vadd.f32 %v1469_v61, %v4071_v60  ;;  %v1358_v1 = vpop.f32.mrb[61].mxu1  ;;  %v1471_v56 = vpop.f32.mrb[77].mxu0 }
 0x2d9   : > { %v1359_v30 = vadd.f32 %v1358_v1, %v4076_v63  ;;  %v1472_v2 = vadd.f32 %v1471_v56, %v4079_v0  ;;  %v1360_v7 = vpop.f32.mrb[62].mxu1  ;;  %v1473_v4 = vpop.f32.mrb[78].mxu0  ;;  %2463 = vmatprep.mubr.bf16.mxu1 %v1659_v50 }
 0x2da   : > { %v1361_v39 = vadd.f32 %v1360_v7, %v4066_v3  ;;  %v1474_v5 = vadd.f32 %v1473_v4, %v4071_v60  ;;  %v1362_v8 = vpop.f32.mrb[63].mxu1  ;;  %v1475_v12 = vpop.f32.mrb[79].mxu0  ;;  %2464 = vmatmul.mubr.bf16.gmra.mrb[120].mxu1 %v1658_v49  ;;  %v1594_v11 = vmax.f32 %v1357_v62, 0.0  ;;  %v1596_v59 = vmax.f32 %v1470_v55, 0.0 }
 0x2db   : > { %v1363_v9 = vadd.f32 %v1362_v8, %v4076_v63  ;;  %v1476_v10 = vadd.f32 %v1475_v12, %v4079_v0  ;;  %v1595_v57 = vmax.f32 %v1359_v30, 0.0  ;;  %v1597_v14 = vmax.f32 %v1472_v2, 0.0  ;;  %v4163_v0 = vld [vmem:[%s4305_s6] ss:$0 sm:$0xff] }
 0x2dc   : > { %v1602_v13 = vmax.f32 %v1361_v39, 0.0  ;;  %v1604_v26 = vmax.f32 %v1474_v5, 0.0 }
 0x2dd   : > { %v1603_v58 = vmax.f32 %v1363_v9, 0.0  ;;  %v1605_v32 = vmax.f32 %v1476_v10, 0.0 }
 0x2de   : > { %v1666_v16 = vpack.c.bf16 %v1602_v13, %v1594_v11  ;;  %v1668_v17 = vpack.c.bf16 %v1604_v26, %v1596_v59 }
 0x2df   : > { %v1667_v3 = vpack.c.bf16 %v1603_v58, %v1595_v57  ;;  %v1669_v53 = vpack.c.bf16 %v1605_v32, %v1597_v14 }
 0x2e1   : > { %2471 = vmatprep.mubr.bf16.mxu1 %v1667_v3 }
 0x2e2   : > { %2472 = vmatmul.mubr.bf16.gmra.mrb[124].mxu1 %v1666_v16 }
 0x2e3   : > { %2560 = vmatprep.mubr.bf16.mxu1 %v1661_v51 }
 0x2ea   : > { %2561 = vmatmul.mubr.bf16.vlgmr.msra.gmra.mrb[128].mxu1 %v1660_v35 }
 0x2eb   : > { %2568 = vmatprep.mubr.bf16.mxu1 %v1669_v53 }
 0x2f2   : > { %2569 = vmatmul.mubr.bf16.gmra.mrb[132].mxu1 %v1668_v17 }
 0x33d   : > { %v2909_v60 = vpop.f32.mrb[64].mxu1  ;;  %v2973_v63 = vpop.f32.mrb[80].mxu0 }
 0x33e   : > { %v2910_v19 = vpop.f32.mrb[65].mxu1  ;;  %v2974_v20 = vpop.f32.mrb[81].mxu0 }
 0x33f   : > { %v2911_v21 = vadd.f32 %v2910_v19, %v2909_v60  ;;  %v2975_v22 = vadd.f32 %v2974_v20, %v2973_v63  ;;  %v2912_v23 = vpop.f32.mrb[66].mxu1  ;;  %v2976_v24 = vpop.f32.mrb[82].mxu0 }
 0x340   : > { %v2913_v27 = vpop.f32.mrb[67].mxu1  ;;  %v2977_v28 = vpop.f32.mrb[83].mxu0 }
 0x341   : > { %v2224_v29 = vadd.f32 %v2911_v21, %v4163_v0  ;;  %v2914_v43 = vadd.f32 %v2913_v27, %v2912_v23  ;;  %v2978_v31 = vadd.f32 %v2977_v28, %v2976_v24 }
 0x343   : > { %v4166_v47 = vadd.f32 %v2975_v22, %v2224_v29  ;;  %v2227_v38 = vadd.f32 %v2914_v43, %v4163_v0 }
 0x345   : > { %v4169_v34 = vadd.f32 %v2978_v31, %v2227_v38  ;;  %v2915_v33 = vpop.f32.mrb[68].mxu1  ;;  %v2979_v54 = vpop.f32.mrb[84].mxu0 }
 0x346   : > { %v2916_v36 = vpop.f32.mrb[69].mxu1  ;;  %v2980_v37 = vpop.f32.mrb[85].mxu0 }
 0x347   : > { %v2917_v40 = vadd.f32 %v2916_v36, %v2915_v33  ;;  %v2981_v48 = vadd.f32 %v2980_v37, %v2979_v54  ;;  %v2918_v25 = vpop.f32.mrb[70].mxu1  ;;  %v2982_v41 = vpop.f32.mrb[86].mxu0 }
 0x348   : > { %v2919_v42 = vpop.f32.mrb[71].mxu1  ;;  %v2983_v44 = vpop.f32.mrb[87].mxu0 }
 0x349   : > { %v2232_v15 = vadd.f32 %v2917_v40, %v4163_v0  ;;  %v2920_v18 = vadd.f32 %v2919_v42, %v2918_v25  ;;  %v2984_v45 = vadd.f32 %v2983_v44, %v2982_v41 }
 0x34b   : > { %v4172_v46 = vadd.f32 %v2981_v48, %v2232_v15  ;;  %v2235_v6 = vadd.f32 %v2920_v18, %v4163_v0 }
 0x34d   : > { %v4175_v49 = vadd.f32 %v2984_v45, %v2235_v6  ;;  %v2921_v35 = vpop.f32.mrb[72].mxu1  ;;  %v2985_v50 = vpop.f32.mrb[88].mxu0 }
 0x34e   : > { %v2922_v51 = vpop.f32.mrb[73].mxu1  ;;  %v2986_v52 = vpop.f32.mrb[89].mxu0 }
 0x34f   : > { %v2923_v61 = vadd.f32 %v2922_v51, %v2921_v35  ;;  %v2987_v62 = vadd.f32 %v2986_v52, %v2985_v50  ;;  %v2924_v55 = vpop.f32.mrb[74].mxu1  ;;  %v2988_v1 = vpop.f32.mrb[90].mxu0 }
 0x350   : > { %v2925_v56 = vpop.f32.mrb[75].mxu1  ;;  %v2989_v30 = vpop.f32.mrb[91].mxu0 }
 0x351   : > { %v2240_v2 = vadd.f32 %v2923_v61, %v4163_v0  ;;  %v2926_v7 = vadd.f32 %v2925_v56, %v2924_v55  ;;  %v2990_v4 = vadd.f32 %v2989_v30, %v2988_v1 }
 0x353   : > { %v4178_v39 = vadd.f32 %v2987_v62, %v2240_v2  ;;  %v2243_v5 = vadd.f32 %v2926_v7, %v4163_v0 }
 0x355   : > { %v4181_v8 = vadd.f32 %v2990_v4, %v2243_v5  ;;  %v2927_v12 = vpop.f32.mrb[76].mxu1  ;;  %v2991_v9 = vpop.f32.mrb[92].mxu0 }
 0x356   : > { %v2928_v10 = vpop.f32.mrb[77].mxu1  ;;  %v2992_v11 = vpop.f32.mrb[93].mxu0 }
 0x357   : > { %v2929_v59 = vadd.f32 %v2928_v10, %v2927_v12  ;;  %v2993_v13 = vadd.f32 %v2992_v11, %v2991_v9  ;;  %v2930_v26 = vpop.f32.mrb[78].mxu1  ;;  %v2994_v57 = vpop.f32.mrb[94].mxu0 }
 0x358   : > { %v2931_v14 = vpop.f32.mrb[79].mxu1  ;;  %v2995_v58 = vpop.f32.mrb[95].mxu0 }
 0x359   : > { %v2248_v32 = vadd.f32 %v2929_v59, %v4163_v0  ;;  %v2932_v16 = vadd.f32 %v2931_v14, %v2930_v26  ;;  %v2996_v17 = vadd.f32 %v2995_v58, %v2994_v57 }
 0x35b   : > { %v4184_v3 = vadd.f32 %v2993_v13, %v2248_v32  ;;  %v2251_v53 = vadd.f32 %v2932_v16, %v4163_v0 }
 0x35d   : > { %v4187_v60 = vadd.f32 %v2996_v17, %v2251_v53  ;;  %v2933_v63 = vpop.f32.mrb[80].mxu1  ;;  %v2997_v19 = vpop.f32.mrb[96].mxu0 }
 0x35e   : > { %v2934_v20 = vpop.f32.mrb[81].mxu1  ;;  %v2998_v21 = vpop.f32.mrb[97].mxu0 }
 0x35f   : > { %v2935_v22 = vadd.f32 %v2934_v20, %v2933_v63  ;;  %v2999_v23 = vadd.f32 %v2998_v21, %v2997_v19  ;;  %v2936_v24 = vpop.f32.mrb[82].mxu1  ;;  %v3000_v27 = vpop.f32.mrb[98].mxu0 }
 0x360   : > { %v2937_v28 = vpop.f32.mrb[83].mxu1  ;;  %v3001_v29 = vpop.f32.mrb[99].mxu0 }
 0x361   : > { %v2256_v43 = vadd.f32 %v2935_v22, %v4163_v0  ;;  %v2938_v31 = vadd.f32 %v2937_v28, %v2936_v24  ;;  %v3002_v38 = vadd.f32 %v3001_v29, %v3000_v27 }
 0x363   : > { %v4190_v33 = vadd.f32 %v2999_v23, %v2256_v43  ;;  %v2259_v54 = vadd.f32 %v2938_v31, %v4163_v0 }
 0x365   : > { %v4193_v36 = vadd.f32 %v3002_v38, %v2259_v54  ;;  %v2939_v37 = vpop.f32.mrb[84].mxu1  ;;  %v3003_v40 = vpop.f32.mrb[100].mxu0 }
 0x366   : > { %v2940_v48 = vpop.f32.mrb[85].mxu1  ;;  %v3004_v25 = vpop.f32.mrb[101].mxu0 }
 0x367   : > { %v2941_v41 = vadd.f32 %v2940_v48, %v2939_v37  ;;  %v3005_v42 = vadd.f32 %v3004_v25, %v3003_v40  ;;  %v2942_v44 = vpop.f32.mrb[86].mxu1  ;;  %v3006_v15 = vpop.f32.mrb[102].mxu0 }
 0x368   : > { %v2943_v18 = vpop.f32.mrb[87].mxu1  ;;  %v3007_v45 = vpop.f32.mrb[103].mxu0 }
 0x369   : > { %v2264_v6 = vadd.f32 %v2941_v41, %v4163_v0  ;;  %v2944_v35 = vadd.f32 %v2943_v18, %v2942_v44  ;;  %v3008_v50 = vadd.f32 %v3007_v45, %v3006_v15 }
 0x36b   : > { %v4196_v51 = vadd.f32 %v3005_v42, %v2264_v6  ;;  %v2267_v52 = vadd.f32 %v2944_v35, %v4163_v0 }
 0x36d   : > { %v4199_v61 = vadd.f32 %v3008_v50, %v2267_v52  ;;  %v2945_v62 = vpop.f32.mrb[88].mxu1  ;;  %v3009_v55 = vpop.f32.mrb[104].mxu0 }
 0x36e   : > { %v2946_v1 = vpop.f32.mrb[89].mxu1  ;;  %v3010_v56 = vpop.f32.mrb[105].mxu0 }
 0x36f   : > { %v2947_v30 = vadd.f32 %v2946_v1, %v2945_v62  ;;  %v3011_v2 = vadd.f32 %v3010_v56, %v3009_v55  ;;  %v2948_v7 = vpop.f32.mrb[90].mxu1  ;;  %v3012_v4 = vpop.f32.mrb[106].mxu0 }
 0x370   : > { %v2949_v5 = vpop.f32.mrb[91].mxu1  ;;  %v3013_v12 = vpop.f32.mrb[107].mxu0 }
 0x371   : > { %v2272_v9 = vadd.f32 %v2947_v30, %v4163_v0  ;;  %v2950_v10 = vadd.f32 %v2949_v5, %v2948_v7  ;;  %v3014_v11 = vadd.f32 %v3013_v12, %v3012_v4 }
 0x373   : > { %v4202_v59 = vadd.f32 %v3011_v2, %v2272_v9  ;;  %v2275_v13 = vadd.f32 %v2950_v10, %v4163_v0 }
 0x375   : > { %v4205_v26 = vadd.f32 %v3014_v11, %v2275_v13  ;;  %v2951_v57 = vpop.f32.mrb[92].mxu1  ;;  %v3015_v14 = vpop.f32.mrb[108].mxu0 }
 0x376   : > { %v2952_v58 = vpop.f32.mrb[93].mxu1  ;;  %v3016_v32 = vpop.f32.mrb[109].mxu0 }
 0x377   : > { %v2953_v16 = vadd.f32 %v2952_v58, %v2951_v57  ;;  %v3017_v17 = vadd.f32 %v3016_v32, %v3015_v14  ;;  %v2954_v53 = vpop.f32.mrb[94].mxu1  ;;  %v3018_v63 = vpop.f32.mrb[110].mxu0 }
 0x378   : > { %v2955_v19 = vpop.f32.mrb[95].mxu1  ;;  %v3019_v20 = vpop.f32.mrb[111].mxu0 }
 0x379   : > { %v2280_v21 = vadd.f32 %v2953_v16, %v4163_v0  ;;  %v2956_v22 = vadd.f32 %v2955_v19, %v2954_v53  ;;  %v3020_v23 = vadd.f32 %v3019_v20, %v3018_v63 }
 0x37b   : > { %v4208_v24 = vadd.f32 %v3017_v17, %v2280_v21  ;;  %v2283_v27 = vadd.f32 %v2956_v22, %v4163_v0 }
 0x37d   : > { %v4211_v28 = vadd.f32 %v3020_v23, %v2283_v27  ;;  %v3037_v29 = vpop.f32.mrb[96].mxu1  ;;  %v3101_v43 = vpop.f32.mrb[112].mxu0 }
 0x37e   : > { %v3038_v31 = vpop.f32.mrb[97].mxu1  ;;  %v3102_v38 = vpop.f32.mrb[113].mxu0 }
 0x37f   : > { %v3039_v54 = vadd.f32 %v3038_v31, %v3037_v29  ;;  %v3103_v37 = vadd.f32 %v3102_v38, %v3101_v43  ;;  %v3040_v40 = vpop.f32.mrb[98].mxu1  ;;  %v3104_v48 = vpop.f32.mrb[114].mxu0 }
 0x380   : > { %v3041_v25 = vpop.f32.mrb[99].mxu1  ;;  %v3105_v41 = vpop.f32.mrb[115].mxu0 }
 0x381   : > { %v2418_v42 = vadd.f32 %v3039_v54, %v4166_v47  ;;  %v3042_v44 = vadd.f32 %v3041_v25, %v3040_v40  ;;  %v3106_v15 = vadd.f32 %v3105_v41, %v3104_v48 }
 0x383   : > { %v2515_v18 = vadd.f32 %v3103_v37, %v2418_v42  ;;  %v2421_v0 = vadd.f32 %v3042_v44, %v4169_v34 }
 0x385   : > { %2577 = vst [vmem:[%s4216_s8] sm:$0xff] %v2515_v18  ;;  %v2518_v45 = vadd.f32 %v3106_v15, %v2421_v0  ;;  %v3043_v6 = vpop.f32.mrb[100].mxu1  ;;  %v3107_v35 = vpop.f32.mrb[116].mxu0 }
 0x386   : > { %v3044_v50 = vpop.f32.mrb[101].mxu1  ;;  %v3108_v52 = vpop.f32.mrb[117].mxu0 }
 0x387   : > { %2578 = vst [vmem:[%s4216_s8 + $0x8] sm:$0xff] %v2518_v45  ;;  %v3045_v62 = vadd.f32 %v3044_v50, %v3043_v6  ;;  %v3109_v55 = vadd.f32 %v3108_v52, %v3107_v35  ;;  %v3046_v47 = vpop.f32.mrb[102].mxu1  ;;  %v3110_v1 = vpop.f32.mrb[118].mxu0 }
 0x388   : > { %v3047_v56 = vpop.f32.mrb[103].mxu1  ;;  %v3111_v30 = vpop.f32.mrb[119].mxu0 }
 0x389   : > { %v2426_v34 = vadd.f32 %v3045_v62, %v4172_v46  ;;  %v3048_v2 = vadd.f32 %v3047_v56, %v3046_v47  ;;  %v3112_v7 = vadd.f32 %v3111_v30, %v3110_v1 }
 0x38b   : > { %v2523_v4 = vadd.f32 %v3109_v55, %v2426_v34  ;;  %v2429_v5 = vadd.f32 %v3048_v2, %v4175_v49 }
 0x38d   : > { %2579 = vst [vmem:[%s4216_s8 + $0x10] sm:$0xff] %v2523_v4  ;;  %v2526_v12 = vadd.f32 %v3112_v7, %v2429_v5  ;;  %v3049_v9 = vpop.f32.mrb[104].mxu1  ;;  %v3113_v10 = vpop.f32.mrb[120].mxu0 }
 0x38e   : > { %v3050_v11 = vpop.f32.mrb[105].mxu1  ;;  %v3114_v13 = vpop.f32.mrb[121].mxu0 }
 0x38f   : > { %2580 = vst [vmem:[%s4216_s8 + $0x18] sm:$0xff] %v2526_v12  ;;  %v3051_v57 = vadd.f32 %v3050_v11, %v3049_v9  ;;  %v3115_v14 = vadd.f32 %v3114_v13, %v3113_v10  ;;  %v3052_v58 = vpop.f32.mrb[106].mxu1  ;;  %v3116_v32 = vpop.f32.mrb[122].mxu0 }
 0x390   : > { %v3053_v16 = vpop.f32.mrb[107].mxu1  ;;  %v3117_v46 = vpop.f32.mrb[123].mxu0 }
 0x391   : > { %v2434_v17 = vadd.f32 %v3051_v57, %v4178_v39  ;;  %v3054_v53 = vadd.f32 %v3053_v16, %v3052_v58  ;;  %v3118_v63 = vadd.f32 %v3117_v46, %v3116_v32 }
 0x393   : > { %v2531_v49 = vadd.f32 %v3115_v14, %v2434_v17  ;;  %v2437_v19 = vadd.f32 %v3054_v53, %v4181_v8 }
 0x395   : > { %2581 = vst [vmem:[%s4216_s8 + $0x20] sm:$0xff] %v2531_v49  ;;  %v2534_v20 = vadd.f32 %v3118_v63, %v2437_v19  ;;  %v3055_v21 = vpop.f32.mrb[108].mxu1  ;;  %v3119_v22 = vpop.f32.mrb[124].mxu0 }
 0x396   : > { %v3056_v23 = vpop.f32.mrb[109].mxu1  ;;  %v3120_v27 = vpop.f32.mrb[125].mxu0 }
 0x397   : > { %2582 = vst [vmem:[%s4216_s8 + $0x28] sm:$0xff] %v2534_v20  ;;  %v3057_v29 = vadd.f32 %v3056_v23, %v3055_v21  ;;  %v3121_v43 = vadd.f32 %v3120_v27, %v3119_v22  ;;  %v3058_v31 = vpop.f32.mrb[110].mxu1  ;;  %v3122_v38 = vpop.f32.mrb[126].mxu0 }
 0x398   : > { %v3059_v54 = vpop.f32.mrb[111].mxu1  ;;  %v3123_v39 = vpop.f32.mrb[127].mxu0 }
 0x399   : > { %v2442_v37 = vadd.f32 %v3057_v29, %v4184_v3  ;;  %v3060_v40 = vadd.f32 %v3059_v54, %v3058_v31  ;;  %v3124_v48 = vadd.f32 %v3123_v39, %v3122_v38 }
 0x39b   : > { %v2539_v8 = vadd.f32 %v3121_v43, %v2442_v37  ;;  %v2445_v25 = vadd.f32 %v3060_v40, %v4187_v60 }
 0x39d   : > { %2583 = vst [vmem:[%s4216_s8 + $0x30] sm:$0xff] %v2539_v8  ;;  %v2542_v41 = vadd.f32 %v3124_v48, %v2445_v25  ;;  %v3061_v42 = vpop.f32.mrb[112].mxu1  ;;  %v3125_v44 = vpop.f32.mrb[128].mxu0 }
 0x39e   : > { %v3062_v15 = vpop.f32.mrb[113].mxu1  ;;  %v3126_v18 = vpop.f32.mrb[129].mxu0 }
 0x39f   : > { %2584 = vst [vmem:[%s4216_s8 + $0x38] sm:$0xff] %v2542_v41  ;;  %v3063_v0 = vadd.f32 %v3062_v15, %v3061_v42  ;;  %v3127_v45 = vadd.f32 %v3126_v18, %v3125_v44  ;;  %v3064_v6 = vpop.f32.mrb[114].mxu1  ;;  %v3128_v35 = vpop.f32.mrb[130].mxu0 }
 0x3a0   : > { %v3065_v50 = vpop.f32.mrb[115].mxu1  ;;  %v3129_v3 = vpop.f32.mrb[131].mxu0 }
 0x3a1   : > { %v2450_v52 = vadd.f32 %v3063_v0, %v4190_v33  ;;  %v3066_v62 = vadd.f32 %v3065_v50, %v3064_v6  ;;  %v3130_v55 = vadd.f32 %v3129_v3, %v3128_v35 }
 0x3a3   : > { %v2547_v60 = vadd.f32 %v3127_v45, %v2450_v52  ;;  %v2453_v47 = vadd.f32 %v3066_v62, %v4193_v36 }
 0x3a5   : > { %2585 = vst [vmem:[%s4216_s8 + $0x40] sm:$0xff] %v2547_v60  ;;  %v2550_v1 = vadd.f32 %v3130_v55, %v2453_v47  ;;  %v3067_v56 = vpop.f32.mrb[116].mxu1  ;;  %v3131_v30 = vpop.f32.mrb[132].mxu0 }
 0x3a6   : > { %v3068_v34 = vpop.f32.mrb[117].mxu1  ;;  %v3132_v2 = vpop.f32.mrb[133].mxu0 }
 0x3a7   : > { %2586 = vst [vmem:[%s4216_s8 + $0x48] sm:$0xff] %v2550_v1  ;;  %v3069_v7 = vadd.f32 %v3068_v34, %v3067_v56  ;;  %v3133_v4 = vadd.f32 %v3132_v2, %v3131_v30  ;;  %v3070_v5 = vpop.f32.mrb[118].mxu1  ;;  %v3134_v12 = vpop.f32.mrb[134].mxu0 }
 0x3a8   : > { %v3071_v9 = vpop.f32.mrb[119].mxu1  ;;  %v3135_v33 = vpop.f32.mrb[135].mxu0 }
 0x3a9   : > { %v2458_v10 = vadd.f32 %v3069_v7, %v4196_v51  ;;  %v3072_v11 = vadd.f32 %v3071_v9, %v3070_v5  ;;  %v3136_v13 = vadd.f32 %v3135_v33, %v3134_v12 }
 0x3ab   : > { %v2555_v36 = vadd.f32 %v3133_v4, %v2458_v10  ;;  %v2461_v57 = vadd.f32 %v3072_v11, %v4199_v61 }
 0x3ad   : > { %2587 = vst [vmem:[%s4216_s8 + $0x50] sm:$0xff] %v2555_v36  ;;  %v2558_v14 = vadd.f32 %v3136_v13, %v2461_v57  ;;  %v3073_v58 = vpop.f32.mrb[120].mxu1 }
 0x3ae   : > { %v3074_v32 = vpop.f32.mrb[121].mxu1 }
 0x3af   : > { %2588 = vst [vmem:[%s4216_s8 + $0x58] sm:$0xff] %v2558_v14  ;;  %v3075_v16 = vadd.f32 %v3074_v32, %v3073_v58  ;;  %v3076_v46 = vpop.f32.mrb[122].mxu1 }
 0x3b0   : > { %v3077_v17 = vpop.f32.mrb[123].mxu1 }
 0x3b1   : > { %v2466_v53 = vadd.f32 %v3075_v16, %v4202_v59  ;;  %v3078_v63 = vadd.f32 %v3077_v17, %v3076_v46 }
 0x3b3   : > { %v2469_v49 = vadd.f32 %v3078_v63, %v4205_v26 }
 0x3b5   : > { %v3079_v51 = vpop.f32.mrb[124].mxu1 }
 0x3b6   : > { %v3080_v19 = vpop.f32.mrb[125].mxu1 }
 0x3b7   : > { %v3081_v20 = vadd.f32 %v3080_v19, %v3079_v51  ;;  %v3082_v21 = vpop.f32.mrb[126].mxu1 }
 0x3b8   : > { %v3083_v61 = vpop.f32.mrb[127].mxu1 }
 0x3b9   : > { %v2474_v22 = vadd.f32 %v3081_v20, %v4208_v24  ;;  %v3084_v23 = vadd.f32 %v3083_v61, %v3082_v21 }
 0x3bb   : > { %v2477_v27 = vadd.f32 %v3084_v23, %v4211_v28 }
 0x3bd   : > { %v3137_v29 = vpop.f32.mrb[128].mxu1 }
 0x3be   : > { %v3138_v43 = vpop.f32.mrb[129].mxu1 }
 0x3bf   : > { %v3139_v59 = vadd.f32 %v3138_v43, %v3137_v29  ;;  %v3140_v31 = vpop.f32.mrb[130].mxu1 }
 0x3c0   : > { %v3141_v38 = vpop.f32.mrb[131].mxu1 }
 0x3c1   : > { %v2563_v26 = vadd.f32 %v3139_v59, %v2466_v53  ;;  %v3142_v54 = vadd.f32 %v3141_v38, %v3140_v31 }
 0x3c3   : > { %2589 = vst [vmem:[%s4216_s8 + $0x60] sm:$0xff] %v2563_v26  ;;  %v2566_v39 = vadd.f32 %v3142_v54, %v2469_v49 }
 0x3c5   : > { %2590 = vst [vmem:[%s4216_s8 + $0x68] sm:$0xff] %v2566_v39  ;;  %v3143_v37 = vpop.f32.mrb[132].mxu1 }
 0x3c6   : > { %v3144_v24 = vpop.f32.mrb[133].mxu1 }
 0x3c7   : > { %v3145_v40 = vadd.f32 %v3144_v24, %v3143_v37  ;;  %v3146_v48 = vpop.f32.mrb[134].mxu1 }
 0x3c8   : > { %v3147_v28 = vpop.f32.mrb[135].mxu1 }
 0x3c9   : > { %v2571_v8 = vadd.f32 %v3145_v40, %v2474_v22  ;;  %v3148_v25 = vadd.f32 %v3147_v28, %v3146_v48 }
 0x3cb   : > { %2591 = vst [vmem:[%s4216_s8 + $0x70] sm:$0xff] %v2571_v8  ;;  %v2574_v41 = vadd.f32 %v3148_v25, %v2477_v27 }
 0x3cd   : > { %2592 = vst [vmem:[%s4216_s8 + $0x78] sm:$0xff] %v2574_v41 }
 0x3ce   : > { %3488 = shalt.err (!%p3485_p4)
}
 0x3cf   : > { %s3489_s29 = scalar_lea.hbm %s4251_s18, 2048  ;;  %s3493_s14 = scalar_lea.hbm %s4306_s7, 4096 }
 0x3d0   : > { %p3490_p9 = scmp.ne.s32.totalorder %s4251_s18, %s3489_s29  ;;  %p3494_p8 = scmp.lt.u32.totalorder %s4251_s18, %s4306_s7 }
 0x3d1   : > { %p3495_p13 = scmp.lt.u32.totalorder %s3493_s14, %s3489_s29  ;;  %p3497_p10 = scmp.lt.u32.totalorder %s3489_s29, %s4251_s18 }
 0x3d2   : > { %p3491_p0 = pnand %p3490_p9, %p3751_p5 }
 0x3d3   : > { %p3496_p6 = por %p3495_p13, %p3494_p8 }
 0x3d4   : > { %p3492_p11 = pneg %p3491_p0 }
 0x3d5   : > { %p3498_p3 = por %p3497_p10, %p3496_p6 }
 0x3d7   : > { %p3499_p7 = pnand %p3498_p3, %p3492_p11 }
 0x3d9   : > { %3502 = shalt.err (!%p3499_p7)
}
 0x3da   : > { %s3561_s16 = smov 128   ;;  %s3562_s12 = smov 8  }
 0x3db   : > { %3211 = dma.vmem_to_hbm [thread:$0]  (%p3751_p5), %s4253_s11, 2048, %s4251_s18, %s2594_s22, %s3561_s16, %s3561_s16, %s3562_s12  }
 0x3dc PF: > { %s4334_s17 = sld [smem:[#allocation15_spill]]  ;;  %s2622_s23 = sand.u32 1, %s3537_s24  }
 0x3dd   : > { %p4336_p1 = scmp.ge.s32.totalorder %s3549_s27, 2  ;;  %s2623_s28 = scalar_lea.sflag [#allocation4], %s2622_s23 }
 0x3e2   : > { %p4335_p12 = scmp.ne.s32.totalorder %s4334_s17, 0 }
 0x3e4   : > { %p3228_p2 = pnand %p4336_p1, %p4335_p12 }
 0x3e6   : > { %3532 = dma.done.wait (!%p3228_p2), %s2623_s28, 2048  }
 0x3e7   : > { %3534 = vsyncadd (!%p3228_p2), %s2623_s28, 4294965248  ;;  %p22_p4 = scmp.ge.s32.totalorder %s3716_s21, 4   ;;  %s4337_s24 = smov %s3541_s25 }
 0x3e8   : > { %s4338_s25 = smov %s3545_s26  ;;  %s4339_s26 = smov %s3747_s13 }
 0x3e9   : > { %s4340_s27 = smov %s3716_s21  ;;  %24 = sbr.rel (!%p22_p4) target bundleno = 9 (0x9), region = 105 }
 0x3f0   :  { %2628 = vsyncpa [#allocation3], 1 }
 0x3f1   :  { %2630 = vsyncpa [#allocation3 + $0x1], 1 }
 0x3f2   :  { %2631 = vsyncpa [#allocation6], 1 }
 0x3f3   :  { %2632 = vsyncpa [#allocation9], 1 }
 0x3f4   :  { %2633 = vsyncpa [#allocation4], 1 }
 0x3f5   :  { %2635 = vsyncpa [#allocation4 + $0x1], 1 }

</bundles_post_ra>
